<compile_context>
chip_gen: v7x
topology: tpu7x:2x2x1
jax: 0.10.0
libtpu: 0.0.40
codegen_flags: <defaults>
</compile_context>

<pallas_src>
import numpy as np
import jax
import jax.numpy as jnp
from jax import lax
from jax.experimental import pallas as pl
from jax.experimental.pallas import tpu as pltpu

PERIODS = (0.25, 0.5, 1.0, 2.0)   # years, register_buffer('periods', ...)
AMP_SMOOTH = 0.25
PHASE_SMOOTH = 0.15
TWO_PI = 2.0 * float(np.pi)
NUM_COEF = 16                     # 1 + 1 + 4 sin + 4 cos + 6 zero pad (8-aligned contraction)


def _round_up(x, m):
    return ((x + m - 1) // m) * m


# --------------------------------------------------------------------------
# Pallas kernel (built per neighbor-count K so row offsets are static)
# --------------------------------------------------------------------------
def _make_kernel(K: int):
    # Row layout of the packed (F, N) input slab (stations on the lane axis):
    #   0            offset
    #   1            trend
    #   2 : 6        amplitude                (4 components)
    #   6 : 10       cos(phase)               (4)
    #   10: 14       sin(phase)               (4)
    #   14: 14+K     spatial weights          (K)
    #   next 4K      neighbor amplitudes      row = R_NA + c*K + k
    #   next 4K      neighbor cos(phase)      row = R_NC + c*K + k
    #   next 4K      neighbor sin(phase)      row = R_NS + c*K + k
    R_AMP, R_COS, R_SIN, R_W = 2, 6, 10, 14
    R_NA = R_W + K
    R_NC = R_NA + 4 * K
    R_NS = R_NC + 4 * K
    inv_k = 1.0 / float(K)
    inv_km1 = 1.0 / float(max(K - 1, 1))   # torch.var is unbiased; guard K == 1

    def kernel(basis_ref,      # (NUM_COEF, tile_t) f32
               packed_ref,     # (F, tile_n)        f32
               out_ref):       # (tile_n, tile_t)   f32
        tile_n = out_ref.shape[0]
        w = packed_ref[R_W:R_W + K, :]                         # (K, tile_n)

        cols = [packed_ref[0:1, :], packed_ref[1:2, :]]        # offset, trend
        sin_cols, cos_cols = [], []
        for c in range(4):
            # --- amplitude smoothing (variance-gated, smoothing_factor=0.25) ---
            nv = packed_ref[R_NA + c * K:R_NA + (c + 1) * K, :]        # (K, tile_n)
            cur_a = packed_ref[R_AMP + c:R_AMP + c + 1, :]             # (1, tile_n)
            wavg = jnp.sum(nv * w, axis=0, keepdims=True)
            mean_nv = jnp.sum(nv, axis=0, keepdims=True) * inv_k
            var = jnp.sum((nv - mean_nv) ** 2, axis=0, keepdims=True) * inv_km1
            # approx reciprocal on the EUP (off the VALU path); ~1e-3 rel error
            af = AMP_SMOOTH * pl.reciprocal(1.0 + 0.1 * var, approx=True)
            sm_amp = (1.0 - af) * cur_a + af * wavg

            # --- phase smoothing (circular/complex, smoothing_factor=0.15) ---
            # cos/sin of the raw phases are precomputed in the wrapper.
            ncos = packed_ref[R_NC + c * K:R_NC + (c + 1) * K, :]
            nsin = packed_ref[R_NS + c * K:R_NS + (c + 1) * K, :]
            cur_cos = packed_ref[R_COS + c:R_COS + c + 1, :]
            cur_sin = packed_ref[R_SIN + c:R_SIN + c + 1, :]
            wc_re = jnp.sum(ncos * w, axis=0, keepdims=True)
            wc_im = jnp.sum(nsin * w, axis=0, keepdims=True)
            consistency = jnp.sqrt(wc_re * wc_re + wc_im * wc_im)
            afp = PHASE_SMOOTH * consistency
            mix_re = (1.0 - afp) * cur_cos + afp * wc_re
            mix_im = (1.0 - afp) * cur_sin + afp * wc_im
            # cos/sin of torch.angle(mixed) without atan2; eps guards 0+0j.
            inv_norm = lax.rsqrt(mix_re * mix_re + mix_im * mix_im + 1e-12)
            amp_scale = sm_amp * inv_norm
            sin_cols.append(amp_scale * mix_re)   # coefficient of sin(w t)
            cos_cols.append(amp_scale * mix_im)   # coefficient of cos(w t)

        zero_pad = jnp.zeros((NUM_COEF - 10, tile_n), jnp.float32)
        coef = jnp.concatenate(cols + sin_cols + cos_cols + [zero_pad], axis=0)

        # (16, tile_n)^T @ (16, tile_t) on the MXU -> (tile_n, tile_t)
        out_ref[...] = lax.dot_general(
            coef, basis_ref[...],
            dimension_numbers=(((0,), (0,)), ((), ())),
            preferred_element_type=jnp.float32)

    return kernel


# --------------------------------------------------------------------------
# Tile selection from a VMEM working-set budget
# --------------------------------------------------------------------------
def _pick_tiles(n_stations, n_time, n_feat, *, budget_bytes=24 << 20,
                max_tile_n=None, max_tile_t=2048):
    t_raw = _round_up(max(n_time, 1), 128)
    max_tile_t = max(128, (max_tile_t // 128) * 128)
    # one time block if it fits the cap, else 1024-lane time tiles
    tile_t = t_raw if t_raw <= max_tile_t else 1024
    t_pad = _round_up(max(n_time, 1), tile_t)

    # 2 pipeline buffers x f32 x (output block + packed block + basis block)
    tile_n = (budget_bytes // 8 - NUM_COEF * tile_t) // (tile_t + n_feat)
    tile_n = max(128, (tile_n // 128) * 128)

    n_blocks128 = -(-max(n_stations, 1) // 128)
    if n_blocks128 >= 2:            # keep >=2 station steps (v7x megacore sharding)
        tile_n = min(tile_n, 128 * (n_blocks128 // 2))
    if max_tile_n is not None:
        tile_n = min(tile_n, max(128, (max_tile_n // 128) * 128))
    tile_n = max(128, tile_n)
    n_pad = _round_up(max(n_stations, 1), tile_n)
    return tile_n, n_pad, tile_t, t_pad


# --------------------------------------------------------------------------
# Wrapper: packing, neighbor gather, basis construction, pallas_call
# --------------------------------------------------------------------------
def improved_spatial_forward(time_vec, constant_offset, linear_trend,
                             seasonal_amps, seasonal_phases,
                             neighbor_idx, neighbor_weights,
                             *, budget_bytes=24 << 20,
                             max_tile_n=None, max_tile_t=2048):
    N, K = neighbor_weights.shape
    T = int(time_vec.shape[0])
    F = 14 + 13 * K                      # rows of the packed station slab

    tile_n, N_pad, tile_t, T_pad = _pick_tiles(
        N, T, F, budget_bytes=budget_bytes,
        max_tile_n=max_tile_n, max_tile_t=max_tile_t)

    f32 = jnp.float32
    t_pad = jnp.zeros((T_pad,), f32).at[:T].set(time_vec.astype(f32))

    # ---- basis (16, T_pad): [1, t, sin(2pi/p t) x4, cos(2pi/p t) x4, 0 x6] ----
    rows = [jnp.ones((T_pad,), f32), t_pad]
    rows += [jnp.sin((TWO_PI / p) * t_pad) for p in PERIODS]
    rows += [jnp.cos((TWO_PI / p) * t_pad) for p in PERIODS]
    rows += [jnp.zeros((T_pad,), f32)] * (NUM_COEF - 10)
    basis = jnp.stack(rows, axis=0)                                  # (16, T_pad)

    # ---- packed per-station slab (F, N_pad): stations on the lane axis ----
    offset = constant_offset.reshape(N).astype(f32)
    trend = linear_trend.reshape(N).astype(f32)
    amps = seasonal_amps.astype(f32)                                  # (N, 4)
    cosP = jnp.cos(seasonal_phases.astype(f32))                       # hoisted EUP work
    sinP = jnp.sin(seasonal_phases.astype(f32))
    w = neighbor_weights.astype(f32)                                  # (N, K)
    nbr_amp = amps[neighbor_idx]                                      # (N, K, 4) gather (glue)
    nbr_cos = cosP[neighbor_idx]
    nbr_sin = sinP[neighbor_idx]

    packed = jnp.concatenate([
        offset[None, :], trend[None, :],
        amps.T, cosP.T, sinP.T,                                       # (4, N) each
        w.T,                                                          # (K, N)
        nbr_amp.transpose(2, 1, 0).reshape(4 * K, N),                 # row = c*K + k
        nbr_cos.transpose(2, 1, 0).reshape(4 * K, N),
        nbr_sin.transpose(2, 1, 0).reshape(4 * K, N),
    ], axis=0)
    packed = jnp.pad(packed, ((0, 0), (0, N_pad - N)))                # (F, N_pad)

    grid = (N_pad // tile_n, T_pad // tile_t)
    in_specs = [
        pl.BlockSpec((NUM_COEF, tile_t), lambda i, j: (0, j)),        # basis
        pl.BlockSpec((F, tile_n), lambda i, j: (0, i)),               # packed slab (1 DMA)
    ]
    out_specs = pl.BlockSpec((tile_n, tile_t), lambda i, j: (i, j))

    # double-buffered f32 working set, with headroom, capped for v7x's 64 MiB VMEM
    work_bytes = 8 * (tile_n * tile_t + F * tile_n + NUM_COEF * tile_t)
    vmem_limit = int(min(max(2 * work_bytes, 32 << 20), 64 << 20))

    out = pl.pallas_call(
        _make_kernel(K),
        out_shape=jax.ShapeDtypeStruct((N_pad, T_pad), jnp.float32),
        grid=grid,
        in_specs=in_specs,
        out_specs=out_specs,
        compiler_params=pltpu.CompilerParams(
            dimension_semantics=("parallel", "parallel"),
            vmem_limit_bytes=vmem_limit,
        ),
    )(basis, packed)

    # TODO(synk): optional bf16 output (v5e HBM-write bound) left out to stay
    # comfortably inside the reference tolerance.
    return out[:N, :T]


# --------------------------------------------------------------------------
# Host-side setup: enhanced neighbor graph (replaces sklearn NearestNeighbors)
# --------------------------------------------------------------------------
def build_enhanced_neighbor_graph(coords, n_neighbors):
    # TODO(synk): sklearn kd_tree replaced by exact brute-force kNN (same result).
    d = np.sqrt(((coords[:, None, :] - coords[None, :, :]) ** 2).sum(-1))
    order = np.argsort(d, axis=1)
    idx = order[:, 1:n_neighbors + 1]                       # drop self
    nd = np.take_along_axis(d, idx, axis=1)
    local_w = np.exp(-nd / (np.mean(nd, axis=1, keepdims=True) * 0.5))
    regional_w = 1.0 / (nd + np.mean(nd) * 0.1)
    combined = 0.7 * local_w + 0.3 * regional_w
    w = combined / (np.sum(combined, axis=1, keepdims=True) + 1e-6)
    return idx.astype(np.int32), w.astype(np.float32)


# --------------------------------------------------------------------------
# Pure-JAX reference (mirrors the PyTorch forward exactly), for validation
# --------------------------------------------------------------------------
def reference_forward(time_vec, offset, trend, amps, phases, nbr_idx, weights):
    t = time_vec[None, :]
    signals = offset[:, None] + trend[:, None] * t
    K = weights.shape[1]
    for c, period in enumerate(PERIODS):
        nv = amps[nbr_idx, c]
        wavg = jnp.sum(nv * weights, axis=1)
        var = jnp.sum((nv - jnp.mean(nv, axis=1, keepdims=True)) ** 2, axis=1) / (K - 1)
        af = AMP_SMOOTH / (1.0 + var * 0.1)
        sm_amp = (1.0 - af) * amps[:, c] + af * wavg
        nvp = phases[nbr_idx, c]
        re = jnp.sum(jnp.cos(nvp) * weights, axis=1)
        im = jnp.sum(jnp.sin(nvp) * weights, axis=1)
        afp = PHASE_SMOOTH * jnp.sqrt(re * re + im * im)
        mre = (1.0 - afp) * jnp.cos(phases[:, c]) + afp * re
        mim = (1.0 - afp) * jnp.sin(phases[:, c]) + afp * im
        sm_ph = jnp.arctan2(mim, mre)
        signals = signals + sm_amp[:, None] * jnp.sin(TWO_PI / period * t + sm_ph[:, None])
    return signals


if __name__ == "__main__":
    # Small shapes consistent with the module (n_neighbors matches the default 12).
    n_stations, n_timepoints, n_neighbors = 200, 60, 12

    key = jax.random.PRNGKey(0)
    k1, k2, k3 = jax.random.split(key, 3)

    # deterministic "parameters" / buffers matching the module's __init__
    coords = np.asarray(jax.random.uniform(k1, (n_stations, 2), dtype=jnp.float32)) * 100.0
    linear_trend = jax.random.normal(k2, (n_stations,), dtype=jnp.float32) * 5.0   # ps00_rates
    constant_offset = jnp.zeros((n_stations,), jnp.float32)
    seasonal_amps = jnp.ones((n_stations, 4), jnp.float32) * 4.0
    seasonal_phases = jax.random.uniform(k3, (n_stations, 4), dtype=jnp.float32) * TWO_PI
    time_vec = jnp.arange(n_timepoints, dtype=jnp.float32) / 12.0                  # years

    idx_np, w_np = build_enhanced_neighbor_graph(coords, n_neighbors)
    neighbor_idx = jnp.asarray(idx_np)
    neighbor_w = jnp.asarray(w_np)

    # 200 stations -> tile_n=128, N_pad=256 => a 2-step station grid (exercises
    # multi-step pipelining and v7x megacore sharding) with one time block.
    out = improved_spatial_forward(time_vec, constant_offset, linear_trend,
                                   seasonal_amps, seasonal_phases,
                                   neighbor_idx, neighbor_w)
    out = jax.block_until_ready(out)

    ref = reference_forward(time_vec, constant_offset, linear_trend,
                            seasonal_amps, seasonal_phases,
                            neighbor_idx, neighbor_w)
    assert out.shape == (n_stations, n_timepoints)
    assert np.allclose(np.asarray(out), np.asarray(ref), rtol=2e-2, atol=2e-2)

    print("KERNEL_OK")
</pallas_src>

<mosaic_0001>
module attributes {stable_mosaic.version = 11 : i64} {
  func.func @kernel(%arg0: i32, %arg1: i32, %arg2: memref<16x128xf32, #tpu.memory_space<vmem>>, %arg3: memref<170x128xf32, #tpu.memory_space<vmem>>, %arg4: memref<128x128xf32, #tpu.memory_space<vmem>>) attributes {dimension_semantics = [#tpu.dimension_semantics<parallel>, #tpu.dimension_semantics<parallel>], iteration_bounds = array<i64: 2, 1>, scalar_prefetch = 0 : i64, scratch_operands = 0 : i64, tpu.core_type = #tpu.core_type<tc>, window_params = [{transform_indices = @transform_0, window_bounds = array<i64: 16, 128>}, {transform_indices = @transform_1, window_bounds = array<i64: 170, 128>}, {transform_indices = @transform_2, window_bounds = array<i64: 128, 128>}]} {
    %c14 = arith.constant 14 : index
    %c0 = arith.constant 0 : index
    %0 = vector.load %arg3[%c14, %c0] : memref<170x128xf32, #tpu.memory_space<vmem>>, vector<12x128xf32>
    %c0_0 = arith.constant 0 : index
    %c0_1 = arith.constant 0 : index
    %1 = vector.load %arg3[%c0_0, %c0_1] : memref<170x128xf32, #tpu.memory_space<vmem>>, vector<1x128xf32>
    %c1 = arith.constant 1 : index
    %c0_2 = arith.constant 0 : index
    %2 = vector.load %arg3[%c1, %c0_2] : memref<170x128xf32, #tpu.memory_space<vmem>>, vector<1x128xf32>
    %c26 = arith.constant 26 : index
    %c0_3 = arith.constant 0 : index
    %3 = vector.load %arg3[%c26, %c0_3] : memref<170x128xf32, #tpu.memory_space<vmem>>, vector<12x128xf32>
    %c2 = arith.constant 2 : index
    %c0_4 = arith.constant 0 : index
    %4 = vector.load %arg3[%c2, %c0_4] : memref<170x128xf32, #tpu.memory_space<vmem>>, vector<1x128xf32>
    %5 = arith.mulf %3, %0 : vector<12x128xf32>
    %cst = arith.constant dense<0.000000e+00> : vector<128xf32>
    %6 = vector.multi_reduction <add>, %5, %cst [0] : vector<12x128xf32> to vector<128xf32>
    %7 = vector.shape_cast %6 : vector<128xf32> to vector<1x128xf32>
    %cst_5 = arith.constant dense<0.000000e+00> : vector<128xf32>
    %8 = vector.multi_reduction <add>, %3, %cst_5 [0] : vector<12x128xf32> to vector<128xf32>
    %9 = vector.shape_cast %8 : vector<128xf32> to vector<1x128xf32>
    %cst_6 = arith.constant 0.0833333358 : f32
    %10 = vector.broadcast %cst_6 : f32 to vector<1x128xf32>
    %11 = arith.mulf %9, %10 : vector<1x128xf32>
    %12 = vector.broadcast %11 : vector<1x128xf32> to vector<12x128xf32>
    %13 = arith.subf %3, %12 : vector<12x128xf32>
    %14 = arith.mulf %13, %13 : vector<12x128xf32>
    %cst_7 = arith.constant dense<0.000000e+00> : vector<128xf32>
    %15 = vector.multi_reduction <add>, %14, %cst_7 [0] : vector<12x128xf32> to vector<128xf32>
    %16 = vector.shape_cast %15 : vector<128xf32> to vector<1x128xf32>
    %cst_8 = arith.constant 0.0909090936 : f32
    %17 = vector.broadcast %cst_8 : f32 to vector<1x128xf32>
    %18 = arith.mulf %16, %17 : vector<1x128xf32>
    %cst_9 = arith.constant 1.000000e-01 : f32
    %19 = vector.broadcast %cst_9 : f32 to vector<1x128xf32>
    %20 = arith.mulf %19, %18 : vector<1x128xf32>
    %cst_10 = arith.constant 1.000000e+00 : f32
    %21 = vector.broadcast %cst_10 : f32 to vector<1x128xf32>
    %22 = arith.addf %21, %20 : vector<1x128xf32>
    %23 = tpu.reciprocal %22 {approx = true} : vector<1x128xf32> -> vector<1x128xf32>
    %cst_11 = arith.constant 2.500000e-01 : f32
    %24 = vector.broadcast %cst_11 : f32 to vector<1x128xf32>
    %25 = arith.mulf %24, %23 : vector<1x128xf32>
    %cst_12 = arith.constant 1.000000e+00 : f32
    %26 = vector.broadcast %cst_12 : f32 to vector<1x128xf32>
    %27 = arith.subf %26, %25 : vector<1x128xf32>
    %28 = arith.mulf %27, %4 : vector<1x128xf32>
    %29 = arith.mulf %25, %7 : vector<1x128xf32>
    %30 = arith.addf %28, %29 : vector<1x128xf32>
    %c74 = arith.constant 74 : index
    %c0_13 = arith.constant 0 : index
    %31 = vector.load %arg3[%c74, %c0_13] : memref<170x128xf32, #tpu.memory_space<vmem>>, vector<12x128xf32>
    %c122 = arith.constant 122 : index
    %c0_14 = arith.constant 0 : index
    %32 = vector.load %arg3[%c122, %c0_14] : memref<170x128xf32, #tpu.memory_space<vmem>>, vector<12x128xf32>
    %c6 = arith.constant 6 : index
    %c0_15 = arith.constant 0 : index
    %33 = vector.load %arg3[%c6, %c0_15] : memref<170x128xf32, #tpu.memory_space<vmem>>, vector<1x128xf32>
    %c10 = arith.constant 10 : index
    %c0_16 = arith.constant 0 : index
    %34 = vector.load %arg3[%c10, %c0_16] : memref<170x128xf32, #tpu.memory_space<vmem>>, vector<1x128xf32>
    %35 = arith.mulf %31, %0 : vector<12x128xf32>
    %cst_17 = arith.constant dense<0.000000e+00> : vector<128xf32>
    %36 = vector.multi_reduction <add>, %35, %cst_17 [0] : vector<12x128xf32> to vector<128xf32>
    %37 = vector.shape_cast %36 : vector<128xf32> to vector<1x128xf32>
    %38 = arith.mulf %32, %0 : vector<12x128xf32>
    %cst_18 = arith.constant dense<0.000000e+00> : vector<128xf32>
    %39 = vector.multi_reduction <add>, %38, %cst_18 [0] : vector<12x128xf32> to vector<128xf32>
    %40 = vector.shape_cast %39 : vector<128xf32> to vector<1x128xf32>
    %41 = arith.mulf %37, %37 : vector<1x128xf32>
    %42 = arith.mulf %40, %40 : vector<1x128xf32>
    %43 = arith.addf %41, %42 : vector<1x128xf32>
    %44 = math.sqrt %43 : vector<1x128xf32>
    %cst_19 = arith.constant 1.500000e-01 : f32
    %45 = vector.broadcast %cst_19 : f32 to vector<1x128xf32>
    %46 = arith.mulf %45, %44 : vector<1x128xf32>
    %cst_20 = arith.constant 1.000000e+00 : f32
    %47 = vector.broadcast %cst_20 : f32 to vector<1x128xf32>
    %48 = arith.subf %47, %46 : vector<1x128xf32>
    %49 = arith.mulf %48, %33 : vector<1x128xf32>
    %50 = arith.mulf %46, %37 : vector<1x128xf32>
    %51 = arith.addf %49, %50 : vector<1x128xf32>
    %cst_21 = arith.constant 1.000000e+00 : f32
    %52 = vector.broadcast %cst_21 : f32 to vector<1x128xf32>
    %53 = arith.subf %52, %46 : vector<1x128xf32>
    %54 = arith.mulf %53, %34 : vector<1x128xf32>
    %55 = arith.mulf %46, %40 : vector<1x128xf32>
    %56 = arith.addf %54, %55 : vector<1x128xf32>
    %57 = arith.mulf %51, %51 : vector<1x128xf32>
    %58 = arith.mulf %56, %56 : vector<1x128xf32>
    %59 = arith.addf %57, %58 : vector<1x128xf32>
    %cst_22 = arith.constant 9.99999996E-13 : f32
    %60 = vector.broadcast %cst_22 : f32 to vector<1x128xf32>
    %61 = arith.addf %59, %60 : vector<1x128xf32>
    %62 = math.rsqrt %61 : vector<1x128xf32>
    %63 = arith.mulf %30, %62 : vector<1x128xf32>
    %64 = arith.mulf %63, %51 : vector<1x128xf32>
    %65 = arith.mulf %63, %56 : vector<1x128xf32>
    %c38 = arith.constant 38 : index
    %c0_23 = arith.constant 0 : index
    %66 = vector.load %arg3[%c38, %c0_23] : memref<170x128xf32, #tpu.memory_space<vmem>>, vector<12x128xf32>
    %c3 = arith.constant 3 : index
    %c0_24 = arith.constant 0 : index
    %67 = vector.load %arg3[%c3, %c0_24] : memref<170x128xf32, #tpu.memory_space<vmem>>, vector<1x128xf32>
    %68 = arith.mulf %66, %0 : vector<12x128xf32>
    %cst_25 = arith.constant dense<0.000000e+00> : vector<128xf32>
    %69 = vector.multi_reduction <add>, %68, %cst_25 [0] : vector<12x128xf32> to vector<128xf32>
    %70 = vector.shape_cast %69 : vector<128xf32> to vector<1x128xf32>
    %cst_26 = arith.constant dense<0.000000e+00> : vector<128xf32>
    %71 = vector.multi_reduction <add>, %66, %cst_26 [0] : vector<12x128xf32> to vector<128xf32>
    %72 = vector.shape_cast %71 : vector<128xf32> to vector<1x128xf32>
    %cst_27 = arith.constant 0.0833333358 : f32
    %73 = vector.broadcast %cst_27 : f32 to vector<1x128xf32>
    %74 = arith.mulf %72, %73 : vector<1x128xf32>
    %75 = vector.broadcast %74 : vector<1x128xf32> to vector<12x128xf32>
    %76 = arith.subf %66, %75 : vector<12x128xf32>
    %77 = arith.mulf %76, %76 : vector<12x128xf32>
    %cst_28 = arith.constant dense<0.000000e+00> : vector<128xf32>
    %78 = vector.multi_reduction <add>, %77, %cst_28 [0] : vector<12x128xf32> to vector<128xf32>
    %79 = vector.shape_cast %78 : vector<128xf32> to vector<1x128xf32>
    %cst_29 = arith.constant 0.0909090936 : f32
    %80 = vector.broadcast %cst_29 : f32 to vector<1x128xf32>
    %81 = arith.mulf %79, %80 : vector<1x128xf32>
    %cst_30 = arith.constant 1.000000e-01 : f32
    %82 = vector.broadcast %cst_30 : f32 to vector<1x128xf32>
    %83 = arith.mulf %82, %81 : vector<1x128xf32>
    %cst_31 = arith.constant 1.000000e+00 : f32
    %84 = vector.broadcast %cst_31 : f32 to vector<1x128xf32>
    %85 = arith.addf %84, %83 : vector<1x128xf32>
    %86 = tpu.reciprocal %85 {approx = true} : vector<1x128xf32> -> vector<1x128xf32>
    %cst_32 = arith.constant 2.500000e-01 : f32
    %87 = vector.broadcast %cst_32 : f32 to vector<1x128xf32>
    %88 = arith.mulf %87, %86 : vector<1x128xf32>
    %cst_33 = arith.constant 1.000000e+00 : f32
    %89 = vector.broadcast %cst_33 : f32 to vector<1x128xf32>
    %90 = arith.subf %89, %88 : vector<1x128xf32>
    %91 = arith.mulf %90, %67 : vector<1x128xf32>
    %92 = arith.mulf %88, %70 : vector<1x128xf32>
    %93 = arith.addf %91, %92 : vector<1x128xf32>
    %c86 = arith.constant 86 : index
    %c0_34 = arith.constant 0 : index
    %94 = vector.load %arg3[%c86, %c0_34] : memref<170x128xf32, #tpu.memory_space<vmem>>, vector<12x128xf32>
    %c134 = arith.constant 134 : index
    %c0_35 = arith.constant 0 : index
    %95 = vector.load %arg3[%c134, %c0_35] : memref<170x128xf32, #tpu.memory_space<vmem>>, vector<12x128xf32>
    %c7 = arith.constant 7 : index
    %c0_36 = arith.constant 0 : index
    %96 = vector.load %arg3[%c7, %c0_36] : memref<170x128xf32, #tpu.memory_space<vmem>>, vector<1x128xf32>
    %c11 = arith.constant 11 : index
    %c0_37 = arith.constant 0 : index
    %97 = vector.load %arg3[%c11, %c0_37] : memref<170x128xf32, #tpu.memory_space<vmem>>, vector<1x128xf32>
    %98 = arith.mulf %94, %0 : vector<12x128xf32>
    %cst_38 = arith.constant dense<0.000000e+00> : vector<128xf32>
    %99 = vector.multi_reduction <add>, %98, %cst_38 [0] : vector<12x128xf32> to vector<128xf32>
    %100 = vector.shape_cast %99 : vector<128xf32> to vector<1x128xf32>
    %101 = arith.mulf %95, %0 : vector<12x128xf32>
    %cst_39 = arith.constant dense<0.000000e+00> : vector<128xf32>
    %102 = vector.multi_reduction <add>, %101, %cst_39 [0] : vector<12x128xf32> to vector<128xf32>
    %103 = vector.shape_cast %102 : vector<128xf32> to vector<1x128xf32>
    %104 = arith.mulf %100, %100 : vector<1x128xf32>
    %105 = arith.mulf %103, %103 : vector<1x128xf32>
    %106 = arith.addf %104, %105 : vector<1x128xf32>
    %107 = math.sqrt %106 : vector<1x128xf32>
    %cst_40 = arith.constant 1.500000e-01 : f32
    %108 = vector.broadcast %cst_40 : f32 to vector<1x128xf32>
    %109 = arith.mulf %108, %107 : vector<1x128xf32>
    %cst_41 = arith.constant 1.000000e+00 : f32
    %110 = vector.broadcast %cst_41 : f32 to vector<1x128xf32>
    %111 = arith.subf %110, %109 : vector<1x128xf32>
    %112 = arith.mulf %111, %96 : vector<1x128xf32>
    %113 = arith.mulf %109, %100 : vector<1x128xf32>
    %114 = arith.addf %112, %113 : vector<1x128xf32>
    %cst_42 = arith.constant 1.000000e+00 : f32
    %115 = vector.broadcast %cst_42 : f32 to vector<1x128xf32>
    %116 = arith.subf %115, %109 : vector<1x128xf32>
    %117 = arith.mulf %116, %97 : vector<1x128xf32>
    %118 = arith.mulf %109, %103 : vector<1x128xf32>
    %119 = arith.addf %117, %118 : vector<1x128xf32>
    %120 = arith.mulf %114, %114 : vector<1x128xf32>
    %121 = arith.mulf %119, %119 : vector<1x128xf32>
    %122 = arith.addf %120, %121 : vector<1x128xf32>
    %cst_43 = arith.constant 9.99999996E-13 : f32
    %123 = vector.broadcast %cst_43 : f32 to vector<1x128xf32>
    %124 = arith.addf %122, %123 : vector<1x128xf32>
    %125 = math.rsqrt %124 : vector<1x128xf32>
    %126 = arith.mulf %93, %125 : vector<1x128xf32>
    %127 = arith.mulf %126, %114 : vector<1x128xf32>
    %128 = arith.mulf %126, %119 : vector<1x128xf32>
    %c50 = arith.constant 50 : index
    %c0_44 = arith.constant 0 : index
    %129 = vector.load %arg3[%c50, %c0_44] : memref<170x128xf32, #tpu.memory_space<vmem>>, vector<12x128xf32>
    %c4 = arith.constant 4 : index
    %c0_45 = arith.constant 0 : index
    %130 = vector.load %arg3[%c4, %c0_45] : memref<170x128xf32, #tpu.memory_space<vmem>>, vector<1x128xf32>
    %131 = arith.mulf %129, %0 : vector<12x128xf32>
    %cst_46 = arith.constant dense<0.000000e+00> : vector<128xf32>
    %132 = vector.multi_reduction <add>, %131, %cst_46 [0] : vector<12x128xf32> to vector<128xf32>
    %133 = vector.shape_cast %132 : vector<128xf32> to vector<1x128xf32>
    %cst_47 = arith.constant dense<0.000000e+00> : vector<128xf32>
    %134 = vector.multi_reduction <add>, %129, %cst_47 [0] : vector<12x128xf32> to vector<128xf32>
    %135 = vector.shape_cast %134 : vector<128xf32> to vector<1x128xf32>
    %cst_48 = arith.constant 0.0833333358 : f32
    %136 = vector.broadcast %cst_48 : f32 to vector<1x128xf32>
    %137 = arith.mulf %135, %136 : vector<1x128xf32>
    %138 = vector.broadcast %137 : vector<1x128xf32> to vector<12x128xf32>
    %139 = arith.subf %129, %138 : vector<12x128xf32>
    %140 = arith.mulf %139, %139 : vector<12x128xf32>
    %cst_49 = arith.constant dense<0.000000e+00> : vector<128xf32>
    %141 = vector.multi_reduction <add>, %140, %cst_49 [0] : vector<12x128xf32> to vector<128xf32>
    %142 = vector.shape_cast %141 : vector<128xf32> to vector<1x128xf32>
    %cst_50 = arith.constant 0.0909090936 : f32
    %143 = vector.broadcast %cst_50 : f32 to vector<1x128xf32>
    %144 = arith.mulf %142, %143 : vector<1x128xf32>
    %cst_51 = arith.constant 1.000000e-01 : f32
    %145 = vector.broadcast %cst_51 : f32 to vector<1x128xf32>
    %146 = arith.mulf %145, %144 : vector<1x128xf32>
    %cst_52 = arith.constant 1.000000e+00 : f32
    %147 = vector.broadcast %cst_52 : f32 to vector<1x128xf32>
    %148 = arith.addf %147, %146 : vector<1x128xf32>
    %149 = tpu.reciprocal %148 {approx = true} : vector<1x128xf32> -> vector<1x128xf32>
    %cst_53 = arith.constant 2.500000e-01 : f32
    %150 = vector.broadcast %cst_53 : f32 to vector<1x128xf32>
    %151 = arith.mulf %150, %149 : vector<1x128xf32>
    %cst_54 = arith.constant 1.000000e+00 : f32
    %152 = vector.broadcast %cst_54 : f32 to vector<1x128xf32>
    %153 = arith.subf %152, %151 : vector<1x128xf32>
    %154 = arith.mulf %153, %130 : vector<1x128xf32>
    %155 = arith.mulf %151, %133 : vector<1x128xf32>
    %156 = arith.addf %154, %155 : vector<1x128xf32>
    %c98 = arith.constant 98 : index
    %c0_55 = arith.constant 0 : index
    %157 = vector.load %arg3[%c98, %c0_55] : memref<170x128xf32, #tpu.memory_space<vmem>>, vector<12x128xf32>
    %c146 = arith.constant 146 : index
    %c0_56 = arith.constant 0 : index
    %158 = vector.load %arg3[%c146, %c0_56] : memref<170x128xf32, #tpu.memory_space<vmem>>, vector<12x128xf32>
    %c8 = arith.constant 8 : index
    %c0_57 = arith.constant 0 : index
    %159 = vector.load %arg3[%c8, %c0_57] : memref<170x128xf32, #tpu.memory_space<vmem>>, vector<1x128xf32>
    %c12 = arith.constant 12 : index
    %c0_58 = arith.constant 0 : index
    %160 = vector.load %arg3[%c12, %c0_58] : memref<170x128xf32, #tpu.memory_space<vmem>>, vector<1x128xf32>
    %161 = arith.mulf %157, %0 : vector<12x128xf32>
    %cst_59 = arith.constant dense<0.000000e+00> : vector<128xf32>
    %162 = vector.multi_reduction <add>, %161, %cst_59 [0] : vector<12x128xf32> to vector<128xf32>
    %163 = vector.shape_cast %162 : vector<128xf32> to vector<1x128xf32>
    %164 = arith.mulf %158, %0 : vector<12x128xf32>
    %cst_60 = arith.constant dense<0.000000e+00> : vector<128xf32>
    %165 = vector.multi_reduction <add>, %164, %cst_60 [0] : vector<12x128xf32> to vector<128xf32>
    %166 = vector.shape_cast %165 : vector<128xf32> to vector<1x128xf32>
    %167 = arith.mulf %163, %163 : vector<1x128xf32>
    %168 = arith.mulf %166, %166 : vector<1x128xf32>
    %169 = arith.addf %167, %168 : vector<1x128xf32>
    %170 = math.sqrt %169 : vector<1x128xf32>
    %cst_61 = arith.constant 1.500000e-01 : f32
    %171 = vector.broadcast %cst_61 : f32 to vector<1x128xf32>
    %172 = arith.mulf %171, %170 : vector<1x128xf32>
    %cst_62 = arith.constant 1.000000e+00 : f32
    %173 = vector.broadcast %cst_62 : f32 to vector<1x128xf32>
    %174 = arith.subf %173, %172 : vector<1x128xf32>
    %175 = arith.mulf %174, %159 : vector<1x128xf32>
    %176 = arith.mulf %172, %163 : vector<1x128xf32>
    %177 = arith.addf %175, %176 : vector<1x128xf32>
    %cst_63 = arith.constant 1.000000e+00 : f32
    %178 = vector.broadcast %cst_63 : f32 to vector<1x128xf32>
    %179 = arith.subf %178, %172 : vector<1x128xf32>
    %180 = arith.mulf %179, %160 : vector<1x128xf32>
    %181 = arith.mulf %172, %166 : vector<1x128xf32>
    %182 = arith.addf %180, %181 : vector<1x128xf32>
    %183 = arith.mulf %177, %177 : vector<1x128xf32>
    %184 = arith.mulf %182, %182 : vector<1x128xf32>
    %185 = arith.addf %183, %184 : vector<1x128xf32>
    %cst_64 = arith.constant 9.99999996E-13 : f32
    %186 = vector.broadcast %cst_64 : f32 to vector<1x128xf32>
    %187 = arith.addf %185, %186 : vector<1x128xf32>
    %188 = math.rsqrt %187 : vector<1x128xf32>
    %189 = arith.mulf %156, %188 : vector<1x128xf32>
    %190 = arith.mulf %189, %177 : vector<1x128xf32>
    %191 = arith.mulf %189, %182 : vector<1x128xf32>
    %c62 = arith.constant 62 : index
    %c0_65 = arith.constant 0 : index
    %192 = vector.load %arg3[%c62, %c0_65] : memref<170x128xf32, #tpu.memory_space<vmem>>, vector<12x128xf32>
    %c5 = arith.constant 5 : index
    %c0_66 = arith.constant 0 : index
    %193 = vector.load %arg3[%c5, %c0_66] : memref<170x128xf32, #tpu.memory_space<vmem>>, vector<1x128xf32>
    %194 = arith.mulf %192, %0 : vector<12x128xf32>
    %cst_67 = arith.constant dense<0.000000e+00> : vector<128xf32>
    %195 = vector.multi_reduction <add>, %194, %cst_67 [0] : vector<12x128xf32> to vector<128xf32>
    %196 = vector.shape_cast %195 : vector<128xf32> to vector<1x128xf32>
    %cst_68 = arith.constant dense<0.000000e+00> : vector<128xf32>
    %197 = vector.multi_reduction <add>, %192, %cst_68 [0] : vector<12x128xf32> to vector<128xf32>
    %198 = vector.shape_cast %197 : vector<128xf32> to vector<1x128xf32>
    %cst_69 = arith.constant 0.0833333358 : f32
    %199 = vector.broadcast %cst_69 : f32 to vector<1x128xf32>
    %200 = arith.mulf %198, %199 : vector<1x128xf32>
    %201 = vector.broadcast %200 : vector<1x128xf32> to vector<12x128xf32>
    %202 = arith.subf %192, %201 : vector<12x128xf32>
    %203 = arith.mulf %202, %202 : vector<12x128xf32>
    %cst_70 = arith.constant dense<0.000000e+00> : vector<128xf32>
    %204 = vector.multi_reduction <add>, %203, %cst_70 [0] : vector<12x128xf32> to vector<128xf32>
    %205 = vector.shape_cast %204 : vector<128xf32> to vector<1x128xf32>
    %cst_71 = arith.constant 0.0909090936 : f32
    %206 = vector.broadcast %cst_71 : f32 to vector<1x128xf32>
    %207 = arith.mulf %205, %206 : vector<1x128xf32>
    %cst_72 = arith.constant 1.000000e-01 : f32
    %208 = vector.broadcast %cst_72 : f32 to vector<1x128xf32>
    %209 = arith.mulf %208, %207 : vector<1x128xf32>
    %cst_73 = arith.constant 1.000000e+00 : f32
    %210 = vector.broadcast %cst_73 : f32 to vector<1x128xf32>
    %211 = arith.addf %210, %209 : vector<1x128xf32>
    %212 = tpu.reciprocal %211 {approx = true} : vector<1x128xf32> -> vector<1x128xf32>
    %cst_74 = arith.constant 2.500000e-01 : f32
    %213 = vector.broadcast %cst_74 : f32 to vector<1x128xf32>
    %214 = arith.mulf %213, %212 : vector<1x128xf32>
    %cst_75 = arith.constant 1.000000e+00 : f32
    %215 = vector.broadcast %cst_75 : f32 to vector<1x128xf32>
    %216 = arith.subf %215, %214 : vector<1x128xf32>
    %217 = arith.mulf %216, %193 : vector<1x128xf32>
    %218 = arith.mulf %214, %196 : vector<1x128xf32>
    %219 = arith.addf %217, %218 : vector<1x128xf32>
    %c110 = arith.constant 110 : index
    %c0_76 = arith.constant 0 : index
    %220 = vector.load %arg3[%c110, %c0_76] : memref<170x128xf32, #tpu.memory_space<vmem>>, vector<12x128xf32>
    %c158 = arith.constant 158 : index
    %c0_77 = arith.constant 0 : index
    %221 = vector.load %arg3[%c158, %c0_77] : memref<170x128xf32, #tpu.memory_space<vmem>>, vector<12x128xf32>
    %c9 = arith.constant 9 : index
    %c0_78 = arith.constant 0 : index
    %222 = vector.load %arg3[%c9, %c0_78] : memref<170x128xf32, #tpu.memory_space<vmem>>, vector<1x128xf32>
    %c13 = arith.constant 13 : index
    %c0_79 = arith.constant 0 : index
    %223 = vector.load %arg3[%c13, %c0_79] : memref<170x128xf32, #tpu.memory_space<vmem>>, vector<1x128xf32>
    %224 = arith.mulf %220, %0 : vector<12x128xf32>
    %cst_80 = arith.constant dense<0.000000e+00> : vector<128xf32>
    %225 = vector.multi_reduction <add>, %224, %cst_80 [0] : vector<12x128xf32> to vector<128xf32>
    %226 = vector.shape_cast %225 : vector<128xf32> to vector<1x128xf32>
    %227 = arith.mulf %221, %0 : vector<12x128xf32>
    %cst_81 = arith.constant dense<0.000000e+00> : vector<128xf32>
    %228 = vector.multi_reduction <add>, %227, %cst_81 [0] : vector<12x128xf32> to vector<128xf32>
    %229 = vector.shape_cast %228 : vector<128xf32> to vector<1x128xf32>
    %230 = arith.mulf %226, %226 : vector<1x128xf32>
    %231 = arith.mulf %229, %229 : vector<1x128xf32>
    %232 = arith.addf %230, %231 : vector<1x128xf32>
    %233 = math.sqrt %232 : vector<1x128xf32>
    %cst_82 = arith.constant 1.500000e-01 : f32
    %234 = vector.broadcast %cst_82 : f32 to vector<1x128xf32>
    %235 = arith.mulf %234, %233 : vector<1x128xf32>
    %cst_83 = arith.constant 1.000000e+00 : f32
    %236 = vector.broadcast %cst_83 : f32 to vector<1x128xf32>
    %237 = arith.subf %236, %235 : vector<1x128xf32>
    %238 = arith.mulf %237, %222 : vector<1x128xf32>
    %239 = arith.mulf %235, %226 : vector<1x128xf32>
    %240 = arith.addf %238, %239 : vector<1x128xf32>
    %cst_84 = arith.constant 1.000000e+00 : f32
    %241 = vector.broadcast %cst_84 : f32 to vector<1x128xf32>
    %242 = arith.subf %241, %235 : vector<1x128xf32>
    %243 = arith.mulf %242, %223 : vector<1x128xf32>
    %244 = arith.mulf %235, %229 : vector<1x128xf32>
    %245 = arith.addf %243, %244 : vector<1x128xf32>
    %246 = arith.mulf %240, %240 : vector<1x128xf32>
    %247 = arith.mulf %245, %245 : vector<1x128xf32>
    %248 = arith.addf %246, %247 : vector<1x128xf32>
    %cst_85 = arith.constant 9.99999996E-13 : f32
    %249 = vector.broadcast %cst_85 : f32 to vector<1x128xf32>
    %250 = arith.addf %248, %249 : vector<1x128xf32>
    %251 = math.rsqrt %250 : vector<1x128xf32>
    %252 = arith.mulf %219, %251 : vector<1x128xf32>
    %253 = arith.mulf %252, %240 : vector<1x128xf32>
    %254 = arith.mulf %252, %245 : vector<1x128xf32>
    %cst_86 = arith.constant 0.000000e+00 : f32
    %255 = vector.broadcast %cst_86 : f32 to vector<6x128xf32>
    %256 = tpu.concatenate %1, %2, %64, %127, %190, %253, %65, %128, %191, %254, %255 in 0 : vector<1x128xf32>, vector<1x128xf32>, vector<1x128xf32>, vector<1x128xf32>, vector<1x128xf32>, vector<1x128xf32>, vector<1x128xf32>, vector<1x128xf32>, vector<1x128xf32>, vector<1x128xf32>, vector<6x128xf32> -> vector<16x128xf32>
    %c0_87 = arith.constant 0 : index
    %c0_88 = arith.constant 0 : index
    %257 = vector.load %arg2[%c0_87, %c0_88] : memref<16x128xf32, #tpu.memory_space<vmem>>, vector<16x128xf32>
    %cst_89 = arith.constant dense<0.000000e+00> : vector<128x128xf32>
    %258 = tpu.matmul %256, %257, %cst_89 {dimension_numbers = #tpu.dot_dimension_numbers<[0], [0], [1], [1], [0, 1, 1, 1], [], []>} : vector<16x128xf32>, vector<16x128xf32>, vector<128x128xf32> -> vector<128x128xf32>
    %c0_90 = arith.constant 0 : index
    %c0_91 = arith.constant 0 : index
    %259 = vector.load %arg4[%c0_90, %c0_91] : memref<128x128xf32, #tpu.memory_space<vmem>>, vector<128x128xf32>
    tpu.vector_store %arg4[%c0_90, %c0_91], %258 {strides = array<i32>} : memref<128x128xf32, #tpu.memory_space<vmem>>, vector<128x128xf32>,
    return
  }
  func.func @transform_0(%arg0: i32, %arg1: i32) -> (i32, i32) {
    %c0_i32 = arith.constant 0 : i32
    %c0_i32_0 = arith.constant 0 : i32
    return %c0_i32, %arg1 : i32, i32
  }
  func.func @transform_1(%arg0: i32, %arg1: i32) -> (i32, i32) {
    %c0_i32 = arith.constant 0 : i32
    %c0_i32_0 = arith.constant 0 : i32
    return %c0_i32, %arg0 : i32, i32
  }
  func.func @transform_2(%arg0: i32, %arg1: i32) -> (i32, i32) {
    %c0_i32 = arith.constant 0 : i32
    return %arg0, %arg1 : i32, i32
  }
}

</mosaic_0001>

<bundles_post_ra>
// kernel: tpu_custom_call.1
= control target key start
LH: loop header
LB: loop body
LE: loop exit
PB: predicated region body
PF: predicated region fallthrough
CT: control target
= control target key end

     0   :  { %7 = vsyncpa [#allocation3], 0  ;;  %s1843_s0 = inlined_call_operand.hbm [shape: f32[16,128], index: 0, kind: input, shape index: {}]   ;;  %s1844_s1 = inlined_call_operand.hbm [shape: f32[170,256], index: 1, kind: input, shape index: {}]   ;;  %s1845_s2 = inlined_call_operand.hbm [shape: f32[256,128], index: 2, kind: output, shape index: {}]  }
   0x1   :  { %8 = vsyncpa [#allocation6], 0 }
   0x2   :  { %10 = vsyncpa [#allocation6 + $0x1], 0 }
   0x3   :  { %11 = vsyncpa [#allocation4], 0 }
   0x4   :  { %13 = vsyncpa [#allocation4 + $0x1], 0  ;;  %s1335_s9 = smov 0   ;;  %s1337_s10 = smov 0  }
   0x5   :  { %s1339_s11 = smov 0   ;;  %s1341_s12 = smov 0  }
   0x6   :  { %s1343_s13 = smov 0   ;;  %s1345_s14 = smov 0  }
   0x7 LB: > { %s978_s15 = sadd.s32 4294967295, %s1310_s14   ;;  %s979_s16 = sadd.s32 4294967294, %s1310_s14   ;;  %s1310_s14 = sphi %s1345_s14, %s19_s14   ;;  %s1306_s13 = sphi %s1343_s13, %s1871_s13   ;;  %s1302_s12 = sphi %s1341_s12, %s1870_s12   ;;  %s1298_s11 = sphi %s1339_s11, %s1869_s11   ;;  %s1294_s10 = sphi %s1337_s10, %s1868_s10   ;;  %s1290_s9 = sphi %s1335_s9, %s1867_s9  }
   0x8   : > { %p71_p0 = scmp.ne.s32.totalorder %s1298_s11, %s1294_s10  ;;  %p72_p1 = scmp.eq.s32.totalorder %s1310_s14, 0 }
   0x9   : > { %p77_p2 = scmp.ne.s32.totalorder %s1294_s10, %s1290_s9  ;;  %p1372_p3 = scmp.eq.s32.totalorder %s978_s15, 0 }
   0xa   : > { %p1376_p4 = por %p72_p1, %p71_p0  ;;  %p103_p5 = scmp.eq.s32.totalorder %s978_s15, 1 }
   0xb   : > { %s1852_s17 = scalar_select %p1372_p3, 1, 0 }
   0xc   : > { %p1382_p6 = por %p1372_p3, %p77_p2  ;;  %p109_p7 = scmp.eq.s32.totalorder %s979_s16, 1 }
   0xd   : > { %p1386_p8 = por %p103_p5, %p71_p0  ;;  %p980_p9 = scmp.ge.s32.totalorder %s1310_s14, 1 }
   0xe   : > { %s1854_s19 = scalar_select %p1382_p6, 1, 0 }
   0xf   : > { %s1855_s20 = scalar_select %p1386_p8, 1, 0 }
  0x10   : > { %p1391_p10 = por %p109_p7, %p77_p2  ;;  %p116_p11 = scmp.lt.s32.totalorder %s1310_s14, 3 }
  0x11   : > { %s1312_s23 = smov [#allocation2]   ;;  %p1084_p1 = scmp.lt.s32.totalorder %s1310_s14, 2 }
  0x12   : > { %s1856_s21 = scalar_select %p1391_p10, 1, 0 }
  0x13   : > { %p1396_p12 = pnand %p980_p9, %p116_p11  ;;  %s130_s24 = sshll.u32 %s1312_s23, 4  ;;  %s1400_s24 = int_to_ptr.vmem [resolvable:$true] %s130_s24 }
  0x14   : > { %p1414_p2 = pnand %p1084_p1, %p1376_p4  ;;  %s31_s27 = sadd.s32 1, %s1306_s13 }
  0x15   : > { %s1857_s22 = scalar_select %p1396_p12, 1, 0 }
  0x16   : > { %p1071_p13 = pneg %p1396_p12  ;;  %s1166_s30 = scalar_lea.hbm %s1843_s0, 256 }
  0x17   : > { %s1859_s26 = scalar_select %p1414_p2, 1, 0 }
  0x18   : > { %p1408_p5 = pnand %p1071_p13, %p1372_p3  ;;  %p1167_p7 = scmp.ne.s32.totalorder %s1843_s0, %s1166_s30 }
  0x19   : > { %p1173_p4 = scmp.lt.u32.totalorder %s1166_s30, %s1843_s0 }
  0x1a   : > { %p1168_p9 = pneg %p1408_p5 }
  0x1c   : > { %p1169_p11 = pnand %p1168_p9, %p1167_p7 }
  0x1e   : > { %p1170_p13 = pneg %p1169_p11 }
  0x20   : > { %p1175_p1 = pnand %p1173_p4, %p1170_p13 }
  0x22   : > { %1178 = shalt.err (!%p1175_p1)
}
  0x23   : > { %s1179_s7 = scalar_lea.vmem %s1400_s24, 256  ;;  %p1187_p6 = scmp.lt.s32.totalorder %s1400_s24, %s1400_s24 }
  0x24   : > { %p1180_p0 = scmp.ne.s32.totalorder %s1400_s24, %s1179_s7  ;;  %p1188_p3 = scmp.lt.s32.totalorder %s1179_s7, %s1179_s7 }
  0x26   : > { %p1182_p10 = pnand %p1180_p0, %p1168_p9  ;;  %p1189_p12 = por %p1188_p3, %p1187_p6 }
  0x28   : > { %p1183_p8 = pneg %p1182_p10 }
  0x2a   : > { %p1190_p2 = pnand %p1189_p12, %p1183_p8 }
  0x2c   : > { %1193 = shalt.err (!%p1190_p2)
}
  0x2d   : > { %s1313_s8 = smov 128   ;;  %s1314_s15 = smov 8  }
  0x2e   : > { %1074 = dma.hbm_to_vmem [thread:$0]  (!%p1408_p5), %s1843_s0, 256, %s1400_s24, [#allocation3], %s1313_s8, %s1313_s8, %s1314_s15  }
  0x2f   : > { %p33_p3 = scmp.ge.s32.totalorder %s31_s27, 2  ;;  %s64_s23 = sadd.s32 1, %s1298_s11 }
  0x30   : > { %s144_s28 = sand.u32 1, %s1298_s11   ;;  %s983_s3 = sshll.u32 %s1306_s13, 7 }
  0x31   : > { %s1873_s27 = smov (%p33_p3, %s31_s27), 0  ;;  %s1061_s29 = smul.u32 176, %s144_s28 }
  0x32   : > { %s61_s30 = ssub.s32 %s1306_s13, %s1873_s27  ;;  %s1453_s5 = scalar_lea.hbm %s1844_s1, %s983_s3 }
  0x33   : > { %p62_p6 = scmp.eq.s32.totalorder %s61_s30, 0  ;;  %s148_s24 = scalar_lea.vmem [#allocation5], %s1061_s29 }
  0x34   : > { %s154_s6 = sshll.u32 %s148_s24, 4  ;;  %s1460_s16 = scalar_lea.sflag [#allocation6], %s144_s28  ;;  %s1458_s6 = int_to_ptr.vmem [resolvable:$true] %s154_s6 }
  0x35   : > { %s1456_s7 = scalar_select %p62_p6, %s1298_s11, %s64_s23  }
  0x36   : > { %s1194_s18 = scalar_lea.hbm %s1453_s5, 2816  ;;  %p1860_p10 = scmp.ne.s32.totalorder %s1859_s26, 0 }
  0x37   : > { %p1195_p8 = scmp.ne.s32.totalorder %s1453_s5, %s1194_s18  ;;  %s1199_s25 = scalar_lea.hbm %s1844_s1, 5632 }
  0x38   : > { %p1196_p12 = pneg %p1860_p10  ;;  %p1200_p2 = scmp.lt.u32.totalorder %s1453_s5, %s1844_s1 }
  0x39   : > { %p1201_p7 = scmp.lt.u32.totalorder %s1199_s25, %s1194_s18  ;;  %p1203_p11 = scmp.lt.u32.totalorder %s1194_s18, %s1453_s5 }
  0x3a   : > { %p1197_p0 = pnand %p1196_p12, %p1195_p8 }
  0x3b   : > { %p1202_p9 = por %p1201_p7, %p1200_p2 }
  0x3c   : > { %p1198_p5 = pneg %p1197_p0 }
  0x3d   : > { %p1204_p13 = por %p1203_p11, %p1202_p9 }
  0x3f   : > { %p1205_p4 = pnand %p1204_p13, %p1198_p5 }
  0x41   : > { %1208 = shalt.err (!%p1205_p4)
}
  0x42   : > { %s1209_s23 = scalar_lea.vmem %s1458_s6, 2816  ;;  %s1315_s28 = smov [#allocation5]  }
  0x43   : > { %p1210_p1 = scmp.ne.s32.totalorder %s1458_s6, %s1209_s23  ;;  %s1214_s24 = sshll.u32 %s1315_s28, 4  ;;  %s1215_s24 = int_to_ptr.vmem [resolvable:$false] %s1214_s24 }
  0x44   : > { %s1216_s30 = scalar_lea.vmem %s1215_s24, 5632  ;;  %p1217_p8 = scmp.lt.s32.totalorder %s1458_s6, %s1215_s24 }
  0x45   : > { %p1212_p3 = pnand %p1210_p1, %p1196_p12  ;;  %p1218_p0 = scmp.lt.s32.totalorder %s1216_s30, %s1209_s23 }
  0x47   : > { %p1213_p6 = pneg %p1212_p3  ;;  %p1219_p2 = por %p1218_p0, %p1217_p8 }
  0x49   : > { %p1220_p7 = pnand %p1219_p2, %p1213_p6 }
  0x4b   : > { %1223 = shalt.err (!%p1220_p7)
}
  0x4c   : > { %s1316_s18 = smov 256   ;;  %p1861_p12 = scmp.ne.s32.totalorder %s1857_s22, 0 }
  0x4d   : > { %1078 = dma.hbm_to_vmem [thread:$0]  (!%p1860_p10), %s1453_s5, 2816, %s1458_s6, %s1460_s16, %s1316_s18, %s1313_s8, %s1314_s15  }
  0x4e   : > { %166 = sbr.rel (%p1861_p12) target bundleno = 622 (0x26e), region = 28  ;;  %p1862_p5 = scmp.ne.s32.totalorder (!%p1861_p12), %s1852_s17, 0 }
  0x55   : > { %1277 = dma.done.wait (%p1862_p5), [#allocation3], 256  }
  0x56   : > { %1279 = vsyncadd (%p1862_p5), [#allocation3], 4294967040  ;;  %s1497_s3 = sand.u32 1, %s1294_s10   ;;  %p1863_p10 = scmp.ne.s32.totalorder %s1854_s19, 0 }
  0x57   : > { %s1062_s26 = smul.u32 176, %s1497_s3  ;;  %s173_s25 = scalar_lea.sflag [#allocation6], %s1497_s3 }
  0x59   : > { %s1501_s29 = scalar_lea.vmem [#allocation5], %s1062_s26 }
  0x5a   : > { %1281 = dma.done.wait (%p1863_p10), %s173_s25, 2816  }
  0x5b   : > { %1283 = vsyncadd (%p1863_p10), %s173_s25, 4294964480  ;;  %vm207_vm0 = vcmask 1043456   ;;  %v1508_v0 = vld [vmem:[%s1501_s29 + $0xe] sm:$0xff]  ;;  %v1511_v1 = vld [vmem:[%s1501_s29 + $0x16] sm:$0xf]  ;;  %vm607_vm9 = vcmask 1040384  }
  0x5c   : > { %v1514_v2 = vld [vmem:[%s1501_s29 + $0x1a] sm:$0xff]  ;;  %v1517_v3 = vld [vmem:[%s1501_s29 + $0x22] sm:$0xf]  ;;  %v246_v5 = vld [vmem:[%s1501_s29 + $0x4a] sm:$0xff]  ;;  %vm609_vm10 = vcmask 1041408   ;;  %vm611_vm11 = vcmask 1042432  }
  0x5d   : > { %v216_v4 = vsel %vm207_vm0, %v1517_v3, 0.0  ;;  %v247_v6 = vld [vmem:[%s1501_s29 + $0x52] sm:$0xf]  ;;  %v248_v8 = vld [vmem:[%s1501_s29 + $0x7a] sm:$0xff]  ;;  %v249_v9 = vld [vmem:[%s1501_s29 + $0x82] sm:$0xf]  ;;  %v252_v10 = vmul.f32 %v246_v5, %v1508_v0 }
  0x5e   : > { %v217_v7 = vadd.f32 %v216_v4, %v1514_v2  ;;  %v253_v11 = vmul.f32 %v247_v6, %v1511_v1  ;;  %v262_v12 = vmul.f32 %v248_v8, %v1508_v0  ;;  %v263_v13 = vmul.f32 %v249_v9, %v1511_v1  ;;  %v1531_v14 = vld [vmem:[%s1501_s29 + $0x26] sm:$0xff]  ;;  %v1534_v15 = vld [vmem:[%s1501_s29 + $0x2e] sm:$0xf]  ;;  %v341_v18 = vld [vmem:[%s1501_s29 + $0x56] sm:$0xff]  ;;  %s986_s17 = sshll.u32 %s1497_s3, 7  ;;  %s1008_s22 = sshll.u32 %s1302_s12, 11 }
  0x5f   : > { %v311_v21 = vsel %vm207_vm0, %v1534_v15, 0.0  ;;  %v342_v22 = vld [vmem:[%s1501_s29 + $0x5e] sm:$0xf]  ;;  %v347_v26 = vmul.f32 %v341_v18, %v1508_v0  ;;  %v343_v30 = vld [vmem:[%s1501_s29 + $0x86] sm:$0xff]  ;;  %v344_v31 = vld [vmem:[%s1501_s29 + $0x8e] sm:$0xf]  ;;  %s1790_s6 = scalar_lea.hbm %s1845_s2, %s1008_s22 }
  0x60   : > { %v218_v16 = vrot.slane %v217_v7, 4  ;;  %v254_v17 = vsel %vm207_vm0, %v253_v11, 0.0  ;;  %v264_v20 = vsel %vm207_vm0, %v263_v13, 0.0  ;;  %v312_v25 = vadd.f32 %v311_v21, %v1531_v14  ;;  %v1552_v57 = vld [vmem:[%s1501_s29 + $0x3a] sm:$0xf]  ;;  %v1555_v62 = vld [vmem:[%s1501_s29 + $0x32] sm:$0xff] }
  0x61   : > { %v255_v19 = vadd.f32 %v254_v17, %v252_v10  ;;  %v265_v24 = vadd.f32 %v264_v20, %v262_v12  ;;  %v348_v27 = vmul.f32 %v342_v22, %v1511_v1  ;;  %v357_v38 = vmul.f32 %v343_v30, %v1508_v0  ;;  %v436_v6 = vld [vmem:[%s1501_s29 + $0x62] sm:$0xff]  ;;  %v437_v9 = vld [vmem:[%s1501_s29 + $0x6a] sm:$0xf]  ;;  %v439_v12 = vld [vmem:[%s1501_s29 + $0x9a] sm:$0xf]  ;;  %s1769_s19 = scalar_lea.vmem [#allocation7], %s986_s17 }
  0x62   : > { %v219_v23 = vadd.f32 %v218_v16, %v217_v7  ;;  %v313_v33 = vrot.slane %v312_v25, 4  ;;  %v358_v39 = vmul.f32 %v344_v31, %v1511_v1  ;;  %v406_v63 = vsel %vm207_vm0, %v1552_v57, 0.0  ;;  %v438_v16 = vld [vmem:[%s1501_s29 + $0x92] sm:$0xff]  ;;  %s881_s8 = sshll.u32 %s1769_s19, 4  ;;  %s867_s16 = scalar_lea.sflag [#allocation4], %s1497_s3  ;;  %s1792_s8 = int_to_ptr.vmem [resolvable:$true] %s881_s8 }
  0x63   : > { %v256_v29 = vrot.slane %v255_v19, 4  ;;  %v266_v32 = vrot.slane %v265_v24, 4  ;;  %v349_v34 = vsel %vm207_vm0, %v348_v27, 0.0  ;;  %v407_v11 = vadd.f32 %v406_v63, %v1555_v62  ;;  %s1224_s4 = scalar_lea.vmem %s1792_s8, 2048  ;;  %p1864_p11 = scmp.ne.s32.totalorder %s1855_s20, 0 }
  0x64   : > { %v220_v28 = vrot.slane %v219_v23, 2  ;;  %v314_v36 = vadd.f32 %v313_v33, %v312_v25  ;;  %v350_v37 = vadd.f32 %v349_v34, %v347_v26  ;;  %v359_v44 = vsel %vm207_vm0, %v358_v39, 0.0  ;;  %p1225_p9 = scmp.ne.s32.totalorder %s1792_s8, %s1224_s4  ;;  %s1317_s12 = smov [#allocation7]  }
  0x65   : > { %v257_v40 = vadd.f32 %v256_v29, %v255_v19  ;;  %v267_v42 = vadd.f32 %v266_v32, %v265_v24  ;;  %v360_v47 = vadd.f32 %v359_v44, %v357_v38  ;;  %v442_v17 = vmul.f32 %v436_v6, %v1508_v0  ;;  %s1228_s23 = sshll.u32 %s1317_s12, 4  ;;  %s1229_s23 = int_to_ptr.vmem [resolvable:$false] %s1228_s23 }
  0x66   : > { %v221_v35 = vadd.f32 %v220_v28, %v219_v23  ;;  %v315_v43 = vrot.slane %v314_v36, 2  ;;  %v351_v45 = vrot.slane %v350_v37, 4  ;;  %v408_v20 = vrot.slane %v407_v11, 4  ;;  %p1226_p13 = pnand %p1225_p9, %p1864_p11  ;;  %s1230_s28 = scalar_lea.vmem %s1229_s23, 4096 }
  0x67   : > { %v258_v48 = vrot.slane %v257_v40, 2  ;;  %v268_v50 = vrot.slane %v267_v42, 2  ;;  %v361_v52 = vrot.slane %v360_v47, 4  ;;  %v443_v21 = vmul.f32 %v437_v9, %v1511_v1  ;;  %p1231_p1 = scmp.lt.s32.totalorder %s1792_s8, %s1229_s23  ;;  %p1232_p3 = scmp.lt.s32.totalorder %s1230_s28, %s1224_s4 }
  0x68   : > { %v222_v41 = vrot.slane %v221_v35, 1  ;;  %v316_v46 = vadd.f32 %v315_v43, %v314_v36  ;;  %v352_v53 = vadd.f32 %v351_v45, %v350_v37  ;;  %v453_v25 = vmul.f32 %v439_v12, %v1511_v1  ;;  %p1227_p4 = pneg %p1226_p13 }
  0x69   : > { %v362_v54 = vadd.f32 %v361_v52, %v360_v47  ;;  %v259_v55 = vadd.f32 %v258_v48, %v257_v40  ;;  %v269_v59 = vadd.f32 %v268_v50, %v267_v42  ;;  %v409_v27 = vadd.f32 %v408_v20, %v407_v11  ;;  %p1233_p6 = por %p1232_p3, %p1231_p1 }
  0x6a   : > { %v223_v49 = vadd.f32 %v222_v41, %v221_v35  ;;  %v317_v51 = vrot.slane %v316_v46, 1  ;;  %v353_v60 = vrot.slane %v352_v53, 2  ;;  %v444_v28 = vsel %vm207_vm0, %v443_v21, 0.0 }
  0x6b   : > { %v363_v61 = vrot.slane %v362_v54, 2  ;;  %v260_v4 = vrot.slane %v259_v55, 1  ;;  %v270_v8 = vrot.slane %v269_v59, 1  ;;  %v452_v29 = vmul.f32 %v438_v16, %v1508_v0  ;;  %p1234_p8 = pnand %p1233_p6, %p1227_p4 }
  0x6c   : > { %v318_v56 = vadd.f32 %v317_v51, %v316_v46  ;;  %v224_v58 = vmul.f32 0.083333336, %v223_v49  ;;  %v354_v10 = vadd.f32 %v353_v60, %v352_v53  ;;  %v445_v32 = vadd.f32 %v444_v28, %v442_v17 }
  0x6d   : > { %v364_v13 = vadd.f32 %v363_v61, %v362_v54  ;;  %v1566_v18 = vadd.f32 %v260_v4, %v259_v55  ;;  %v1571_v24 = vadd.f32 %v270_v8, %v269_v59  ;;  %v410_v34 = vrot.slane %v409_v27, 2 }
  0x6e   : > { %v319_v5 = vmul.f32 0.083333336, %v318_v56  ;;  %v226_v7 = vsub.f32 %v1517_v3, %v224_v58  ;;  %v225_v22 = vsub.f32 %v1514_v2, %v224_v58  ;;  %v355_v26 = vrot.slane %v354_v10, 1 }
  0x6f   : > { %v365_v31 = vrot.slane %v364_v13, 1  ;;  %v454_v35 = vsel %vm207_vm0, %v453_v25, 0.0  ;;  %v272_v37 = vmul.f32 %v1566_v18, %v1566_v18  ;;  %v273_v38 = vmul.f32 %v1571_v24, %v1571_v24 }
  0x70   : > { %v321_v19 = vsub.f32 %v1534_v15, %v319_v5  ;;  %v228_v23 = vmul.f32 %v226_v7, %v226_v7  ;;  %v320_v30 = vsub.f32 %v1531_v14, %v319_v5  ;;  %v227_v36 = vmul.f32 %v225_v22, %v225_v22  ;;  %v1610_v22 = vld [vmem:[%s1501_s29 + $0x46] sm:$0xf] }
  0x71   : > { %v446_v39 = vrot.slane %v445_v32, 4  ;;  %v1583_v41 = vadd.f32 %v355_v26, %v354_v10  ;;  %v411_v42 = vadd.f32 %v410_v34, %v409_v27  ;;  %v455_v43 = vadd.f32 %v454_v35, %v452_v29  ;;  %v1616_v27 = vld [vmem:[%s1501_s29 + $0x3e] sm:$0xff] }
  0x72   : > { %v323_v33 = vmul.f32 %v321_v19, %v321_v19  ;;  %v229_v40 = vsel %vm207_vm0, %v228_v23, 0.0  ;;  %v322_v44 = vmul.f32 %v320_v30, %v320_v30  ;;  %v1585_v45 = vadd.f32 %v365_v31, %v364_v13 }
  0x73   : > { %v206_v47 = vmul.f32 %v1517_v3, %v1511_v1  ;;  %v230_v48 = vadd.f32 %v229_v40, %v227_v36  ;;  %v412_v49 = vrot.slane %v411_v42, 1  ;;  %v447_v50 = vadd.f32 %v446_v39, %v445_v32 }
  0x74   : > { %v324_v46 = vsel %vm207_vm0, %v323_v33, 0.0  ;;  %v1590_v51 = vadd.f32 %v273_v38, %v272_v37  ;;  %v367_v52 = vmul.f32 %v1583_v41, %v1583_v41  ;;  %v456_v53 = vrot.slane %v455_v43, 4 }
  0x75   : > { %v325_v54 = vadd.f32 %v324_v46, %v322_v44  ;;  %v368_v55 = vmul.f32 %v1585_v45, %v1585_v45  ;;  %v413_v56 = vadd.f32 %v412_v49, %v411_v42  ;;  %v448_v58 = vrot.slane %v447_v50, 2 }
  0x76   : > { %v205_v59 = vmul.f32 %v1514_v2, %v1508_v0  ;;  %v457_v60 = vadd.f32 %v456_v53, %v455_v43  ;;  %v208_v3 = vsel %vm207_vm0, %v206_v47, 0.0  ;;  %v231_v61 = vrot.slane %v230_v48, 4  ;;  %v531_v47 = vld [vmem:[%s1501_s29 + $0x6e] sm:$0xff] }
  0x77   : > { %1142 = vrsqrt.f32 %v1590_v51  ;;  %v414_v63 = vmul.f32 0.083333336, %v413_v56  ;;  %v449_v4 = vadd.f32 %v448_v58, %v447_v50  ;;  %v326_v6 = vrot.slane %v325_v54, 4  ;;  %v533_v50 = vld [vmem:[%s1501_s29 + $0x9e] sm:$0xff]  ;;  %v534_v58 = vld [vmem:[%s1501_s29 + $0xa6] sm:$0xf] }
  0x78   : > { %v458_v5 = vrot.slane %v457_v60, 2  ;;  %v1600_v7 = vadd.f32 %v368_v55, %v367_v52  ;;  %v209_v8 = vadd.f32 %v208_v3, %v205_v59  ;;  %v232_v11 = vadd.f32 %v231_v61, %v230_v48  ;;  %v532_v48 = vld [vmem:[%s1501_s29 + $0x76] sm:$0xf] }
  0x79   : > { %v415_v9 = vsub.f32 %v1555_v62, %v414_v63  ;;  %v416_v10 = vsub.f32 %v1552_v57, %v414_v63  ;;  %v450_v2 = vrot.slane %v449_v4, 1  ;;  %v302_v12 = vmul.f32 %v1534_v15, %v1511_v1 }
  0x7a   : > { %v459_v13 = vadd.f32 %v458_v5, %v457_v60  ;;  %v327_v19 = vadd.f32 %v326_v6, %v325_v54  ;;  %1144 = vrsqrt.f32 %v1600_v7  ;;  %v210_v23 = vrot.slane %v209_v8, 4 }
  0x7b   : > { %v417_v16 = vmul.f32 %v415_v9, %v415_v9  ;;  %v418_v17 = vmul.f32 %v416_v10, %v416_v10  ;;  %v1607_v20 = vadd.f32 %v450_v2, %v449_v4  ;;  %v301_v25 = vmul.f32 %v1531_v14, %v1508_v0 }
  0x7c   : > { %v460_v21 = vrot.slane %v459_v13, 1  ;;  %v233_v15 = vrot.slane %v232_v11, 2  ;;  %v303_v28 = vsel %vm207_vm0, %v302_v12, 0.0  ;;  %v501_v32 = vsel %vm207_vm0, %v1610_v22, 0.0 }
  0x7d   : > { %v419_v26 = vsel %vm207_vm0, %v418_v17, 0.0  ;;  %v462_v31 = vmul.f32 %v1607_v20, %v1607_v20  ;;  %v328_v33 = vrot.slane %v327_v19, 2  ;;  %v502_v35 = vadd.f32 %v501_v32, %v1616_v27 }
  0x7e   : > { %v420_v29 = vadd.f32 %v419_v26, %v417_v16  ;;  %v1619_v30 = vadd.f32 %v460_v21, %v459_v13  ;;  %v1628_v37 = vadd.f32 %v210_v23, %v209_v8  ;;  %v1630_v38 = vadd.f32 %v303_v28, %v301_v25 }
  0x7f   : > { %v234_v39 = vadd.f32 %v233_v15, %v232_v11  ;;  %v503_v43 = vrot.slane %v502_v35, 4  ;;  %v329_v46 = vadd.f32 %v328_v33, %v327_v19  ;;  %vm277_vm1 = vcmp.eq.f32.partialorder %v1590_v51, inf }
  0x80   : > { %v421_v14 = vrot.slane %v420_v29, 4  ;;  %v463_v34 = vmul.f32 %v1619_v30, %v1619_v30  ;;  %v212_v53 = vrot.slane %v1628_v37, 2  ;;  %v305_v55 = vrot.slane %v1630_v38, 4 }
  0x81   : > { %v1143_v36 = vpop.eup %1142  ;;  %v235_v54 = vrot.slane %v234_v39, 1  ;;  %v504_v56 = vadd.f32 %v503_v43, %v502_v35  ;;  %vm279_vm2 = vcmp.eq.f32.partialorder %v1590_v51, 0.0  ;;  %v280_v59 = vand.u32 2147483648, %v1590_v51 }
  0x82   : > { %v422_v40 = vadd.f32 %v421_v14, %v420_v29  ;;  %v1632_v42 = vadd.f32 %v463_v34, %v462_v31  ;;  %v276_v44 = vmul.f32 %v1143_v36, %v1590_v51  ;;  %v537_v60 = vmul.f32 %v531_v47, %v1508_v0 }
  0x83   : > { %v538_v3 = vmul.f32 %v532_v48, %v1511_v1  ;;  %v330_v63 = vrot.slane %v329_v46, 1  ;;  %v505_v4 = vrot.slane %v504_v56, 2  ;;  %v547_v5 = vmul.f32 %v533_v50, %v1508_v0 }
  0x84   : > { %1146 = vrsqrt.f32 %v1632_v42  ;;  %v423_v49 = vrot.slane %v422_v40, 2  ;;  %v1145_v52 = vpop.eup %1144  ;;  %v278_v61 = vsel %vm277_vm1, %v1590_v51, %v276_v44  ;;  %v548_v10 = vmul.f32 %v534_v58, %v1511_v1  ;;  %v250_v58 = vld [vmem:[%s1501_s29 + $0x6] sm:$0x1] }
  0x85   : > { %v371_v6 = vmul.f32 %v1145_v52, %v1600_v7  ;;  %v539_v9 = vsel %vm207_vm0, %v538_v3, 0.0  ;;  %v236_v2 = vadd.f32 %v235_v54, %v234_v39  ;;  %vm372_vm3 = vcmp.eq.f32.partialorder %v1600_v7, inf }
  0x86   : > { %v424_v8 = vadd.f32 %v423_v49, %v422_v40  ;;  %v396_v11 = vmul.f32 %v1555_v62, %v1508_v0  ;;  %v506_v12 = vadd.f32 %v505_v4, %v504_v56  ;;  %vm374_vm4 = vcmp.eq.f32.partialorder %v1600_v7, 0.0 }
  0x87   : > { %v397_v13 = vmul.f32 %v1552_v57, %v1511_v1  ;;  %v540_v16 = vadd.f32 %v539_v9, %v537_v60  ;;  %v549_v17 = vsel %vm207_vm0, %v548_v10, 0.0  ;;  %v281_v19 = vsel %vm279_vm2, %v280_v59, %v278_v61  ;;  %v251_v59 = vld [vmem:[%s1501_s29 + $0xa] sm:$0x1] }
  0x88   : > { %v375_v21 = vand.u32 2147483648, %v1600_v7  ;;  %v507_v23 = vrot.slane %v506_v12, 1  ;;  %v550_v25 = vadd.f32 %v549_v17, %v547_v5  ;;  %v331_v26 = vadd.f32 %v330_v63, %v329_v46 }
  0x89   : > { %v373_v15 = vsel %vm372_vm3, %v1600_v7, %v371_v6  ;;  %v425_v62 = vrot.slane %v424_v8, 1  ;;  %v541_v28 = vrot.slane %v540_v16, 4  ;;  %v237_v31 = vmul.f32 0.09090909, %v236_v2 }
  0x8a   : > { %vm467_vm5 = vcmp.eq.f32.partialorder %v1632_v42, inf  ;;  %v508_v57 = vadd.f32 %v507_v23, %v506_v12  ;;  %v551_v32 = vrot.slane %v550_v25, 4  ;;  %v282_v33 = vmul.f32 0.15, %v281_v19 }
  0x8b   : > { %v470_v51 = vand.u32 2147483648, %v1632_v42  ;;  %v542_v34 = vadd.f32 %v541_v28, %v540_v16  ;;  %v376_v35 = vsel %vm374_vm4, %v375_v21, %v373_v15  ;;  %vm469_vm6 = vcmp.eq.f32.partialorder %v1632_v42, 0.0  ;;  %v346_v21 = vld [vmem:[%s1501_s29 + $0xb] sm:$0x1] }
  0x8c   : > { %v509_v36 = vmul.f32 0.083333336, %v508_v57  ;;  %v552_v39 = vadd.f32 %v551_v32, %v550_v25  ;;  %v332_v40 = vmul.f32 0.09090909, %v331_v26  ;;  %v426_v43 = vadd.f32 %v425_v62, %v424_v8 }
  0x8d   : > { %v543_v46 = vrot.slane %v542_v34, 2  ;;  %v238_v47 = vmul.f32 0.1, %v237_v31  ;;  %v398_v48 = vsel %vm207_vm0, %v397_v13, 0.0  ;;  %v377_v7 = vmul.f32 0.15, %v376_v35 }
  0x8e   : > { %v1147_v29 = vpop.eup %1146  ;;  %v510_v49 = vsub.f32 %v1616_v27, %v509_v36  ;;  %v511_v50 = vsub.f32 %v1610_v22, %v509_v36  ;;  %v553_v56 = vrot.slane %v552_v39, 2  ;;  %v283_v60 = vsub.f32 1.0, %v282_v33 }
  0x8f   : > { %v466_v14 = vmul.f32 %v1147_v29, %v1632_v42  ;;  %v544_v54 = vadd.f32 %v543_v46, %v542_v34  ;;  %v1676_v3 = vadd.f32 %v305_v55, %v1630_v38  ;;  %v333_v63 = vmul.f32 0.1, %v332_v40 }
  0x90   : > { %v512_v61 = vmul.f32 %v510_v49, %v510_v49  ;;  %v399_v4 = vadd.f32 %v398_v48, %v396_v11  ;;  %v427_v5 = vmul.f32 0.09090909, %v426_v43  ;;  %v239_v8 = vadd.f32 1.0, %v238_v47  ;;  %v345_v11 = vld [vmem:[%s1501_s29 + $0x7] sm:$0x1] }
  0x91   : > { %v468_v44 = vsel %vm467_vm5, %v1632_v42, %v466_v14  ;;  %v513_v42 = vmul.f32 %v511_v50, %v511_v50  ;;  %v545_v6 = vrot.slane %v544_v54, 1  ;;  %v554_v2 = vadd.f32 %v553_v56, %v552_v39  ;;  %v441_v14 = vld [vmem:[%s1501_s29 + $0xc] sm:$0x1] }
  0x92   : > { %v471_v52 = vsel %vm469_vm6, %v470_v51, %v468_v44  ;;  %v285_v12 = vmul.f32 %v282_v33, %v1566_v18  ;;  %v378_v13 = vsub.f32 1.0, %v377_v7  ;;  %v284_v38 = vmul.f32 %v283_v60, %v250_v58 }
  0x93   : > { %v472_v9 = vmul.f32 0.15, %v471_v52  ;;  %v514_v10 = vsel %vm207_vm0, %v513_v42, 0.0  ;;  %v1680_v17 = vadd.f32 %v545_v6, %v544_v54  ;;  %v287_v55 = vmul.f32 %v283_v60, %v251_v59 }
  0x94   : > { %v515_v16 = vadd.f32 %v514_v10, %v512_v61  ;;  %v288_v19 = vmul.f32 %v282_v33, %v1571_v24  ;;  %v555_v23 = vrot.slane %v554_v2, 1  ;;  %v334_v25 = vadd.f32 1.0, %v333_v63  ;;  %v440_v33 = vld [vmem:[%s1501_s29 + $0x8] sm:$0x1] }
  0x95   : > { %v400_v26 = vrot.slane %v399_v4, 4  ;;  %v428_v15 = vmul.f32 0.1, %v427_v5  ;;  %v380_v28 = vmul.f32 %v377_v7, %v1583_v41  ;;  %v473_v18 = vsub.f32 1.0, %v472_v9 }
  0x96   : > { %v516_v62 = vrot.slane %v515_v16, 4  ;;  %v1686_v29 = vadd.f32 %v555_v23, %v554_v2  ;;  %v557_v31 = vmul.f32 %v1680_v17, %v1680_v17  ;;  %v379_v57 = vmul.f32 %v378_v13, %v345_v11 }
  0x97   : > { %v382_v32 = vmul.f32 %v378_v13, %v346_v21  ;;  %v383_v24 = vmul.f32 %v377_v7, %v1585_v45  ;;  %1148 = vrcp.f32 %v239_v8  ;;  %v1693_v34 = vadd.f32 %v285_v12, %v284_v38 }
  0x98   : > { %v517_v51 = vadd.f32 %v516_v62, %v515_v16  ;;  %v1695_v35 = vadd.f32 %v288_v19, %v287_v55  ;;  %v558_v41 = vmul.f32 %v1686_v29, %v1686_v29  ;;  %v429_v36 = vadd.f32 1.0, %v428_v15 }
  0x99   : > { %v475_v39 = vmul.f32 %v472_v9, %v1607_v20  ;;  %v492_v40 = vmul.f32 %v1610_v22, %v1511_v1  ;;  %v474_v44 = vmul.f32 %v473_v18, %v440_v33  ;;  %v477_v45 = vmul.f32 %v473_v18, %v441_v14 }
  0x9a   : > { %v518_v43 = vrot.slane %v517_v51, 2  ;;  %v478_v46 = vmul.f32 %v472_v9, %v1619_v30  ;;  %v559_v47 = vadd.f32 %v558_v41, %v557_v31  ;;  %1150 = vrcp.f32 %v334_v25 }
  0x9b   : > { %v1703_v48 = vadd.f32 %v380_v28, %v379_v57  ;;  %v1705_v49 = vadd.f32 %v383_v24, %v382_v32  ;;  %v290_v7 = vmul.f32 %v1693_v34, %v1693_v34  ;;  %v291_v20 = vmul.f32 %v1695_v35, %v1695_v35  ;;  %v204_v57 = vld [vmem:[%s1501_s29 + $0x2] sm:$0x1] }
  0x9c   : > { %v519_v50 = vadd.f32 %v518_v43, %v517_v51  ;;  %v491_v1 = vmul.f32 %v1616_v27, %v1508_v0  ;;  %1152 = vrsqrt.f32 %v559_v47  ;;  %v213_v22 = vadd.f32 %v212_v53, %v1628_v37  ;;  %v535_v43 = vld [vmem:[%s1501_s29 + $0x9] sm:$0x1] }
  0x9d   : > { %v493_v30 = vsel %vm207_vm0, %v492_v40, 0.0  ;;  %v401_v54 = vadd.f32 %v400_v26, %v399_v4  ;;  %1154 = vrcp.f32 %v429_v36  ;;  %v1717_v56 = vadd.f32 %v475_v39, %v474_v44  ;;  %v536_v44 = vld [vmem:[%s1501_s29 + $0xd] sm:$0x1] }
  0x9e   : > { %v520_v52 = vrot.slane %v519_v50, 1  ;;  %v1719_v58 = vadd.f32 %v478_v46, %v477_v45  ;;  %v385_v59 = vmul.f32 %v1703_v48, %v1703_v48  ;;  %v386_v0 = vmul.f32 %v1705_v49, %v1705_v49  ;;  %v300_v46 = vld [vmem:[%s1501_s29 + $0x3] sm:$0x1] }
  0x9f   : > { %v292_v60 = vadd.f32 %v291_v20, %v290_v7  ;;  %v307_v61 = vrot.slane %v1676_v3, 2  ;;  %v494_v37 = vadd.f32 %v493_v30, %v491_v1  ;;  %v214_v53 = vrot.slane %v213_v22, 1 }
  0xa0   : > { %v521_v27 = vadd.f32 %v520_v52, %v519_v50  ;;  %v402_v4 = vrot.slane %v401_v54, 2  ;;  %v480_v5 = vmul.f32 %v1717_v56, %v1717_v56  ;;  %v481_v6 = vmul.f32 %v1719_v58, %v1719_v58 }
  0xa1   : > { %v1149_v63 = vpop.eup %1148  ;;  %v387_v8 = vadd.f32 %v386_v0, %v385_v59  ;;  %v293_v10 = vadd.f32 1e-12, %v292_v60  ;;  %v308_v2 = vadd.f32 %v307_v61, %v1676_v3  ;;  %v495_v12 = vrot.slane %v494_v37, 4  ;;  %v395_v59 = vld [vmem:[%s1501_s29 + $0x4] sm:$0x1] }
  0xa2   : > { %v522_v42 = vmul.f32 0.09090909, %v521_v27  ;;  %v215_v16 = vadd.f32 %v214_v53, %v213_v22  ;;  %v241_v38 = vmul.f32 0.25, %v1149_v63  ;;  %v403_v11 = vadd.f32 %v402_v4, %v401_v54 }
  0xa3   : > { %v482_v21 = vadd.f32 %v481_v6, %v480_v5  ;;  %vm562_vm7 = vcmp.eq.f32.partialorder %v559_v47, inf  ;;  %v565_v23 = vand.u32 2147483648, %v559_v47  ;;  %v388_v25 = vadd.f32 1e-12, %v387_v8 }
  0xa4   : > { %v523_v9 = vmul.f32 0.1, %v522_v42  ;;  %v1151_v13 = vpop.eup %1150  ;;  %vm564_vm8 = vcmp.eq.f32.partialorder %v559_v47, 0.0  ;;  %v309_v62 = vrot.slane %v308_v2, 1  ;;  %v496_v28 = vadd.f32 %v495_v12, %v494_v37 }
  0xa5   : > { %v336_v3 = vmul.f32 0.25, %v1151_v13  ;;  %v242_v18 = vsub.f32 1.0, %v241_v38  ;;  %v483_v32 = vadd.f32 1e-12, %v482_v21  ;;  %v404_v33 = vrot.slane %v403_v11, 1 }
  0xa6   : > { %v524_v55 = vadd.f32 1.0, %v523_v9  ;;  %v1153_v19 = vpop.eup %1152  ;;  %v244_v41 = vmul.f32 %v241_v38, %v215_v16  ;;  %v310_v36 = vadd.f32 %v309_v62, %v308_v2  ;;  %v497_v40 = vrot.slane %v496_v28, 2  ;;  %v201_v2 = vld [vmem:[%s1501_s29 + $0x1] sm:$0x1]  ;;  %v490_v21 = vld [vmem:[%s1501_s29 + $0x5] sm:$0x1] }
  0xa7   : > { %v561_v26 = vmul.f32 %v1153_v19, %v559_v47  ;;  %v1155_v15 = vpop.eup %1154  ;;  %v337_v39 = vsub.f32 1.0, %v336_v3  ;;  %v243_v45 = vmul.f32 %v242_v18, %v204_v57  ;;  %v405_v20 = vadd.f32 %v404_v33, %v403_v11 }
  0xa8   : > { %1156 = vrcp.f32 %v524_v55  ;;  %v431_v14 = vmul.f32 0.25, %v1155_v15  ;;  %v339_v54 = vmul.f32 %v336_v3, %v310_v36  ;;  %v498_v0 = vadd.f32 %v497_v40, %v496_v28 }
  0xa9   : > { %1158 = vrsqrt.f32 %v293_v10  ;;  %v563_v31 = vsel %vm562_vm7, %v559_v47, %v561_v26  ;;  %v338_v52 = vmul.f32 %v337_v39, %v300_v46  ;;  %v245_v60 = vadd.f32 %v244_v41, %v243_v45 }
  0xaa   : > { %v566_v24 = vsel %vm564_vm8, %v565_v23, %v563_v31  ;;  %1160 = vrsqrt.f32 %v388_v25  ;;  %v432_v1 = vsub.f32 1.0, %v431_v14  ;;  %v434_v63 = vmul.f32 %v431_v14, %v405_v20  ;;  %v200_v25 = vld [vmem:[%s1501_s29] sm:$0x1] }
  0xab   : > { %v567_v51 = vmul.f32 0.15, %v566_v24  ;;  %1162 = vrsqrt.f32 %v483_v32  ;;  %v340_v4 = vadd.f32 %v339_v54, %v338_v52  ;;  %v499_v5 = vrot.slane %v498_v0, 1 }
  0xac   : > { %v433_v42 = vmul.f32 %v432_v1, %v395_v59  ;;  %v584_v23 = vrot.slane %v201_v2, 7  ;;  %vm614_vm12 = vcmask 1044480   ;;  %vm616_vm13 = vcmask 1045504  }
  0xad   : > { %v568_v50 = vsub.f32 1.0, %v567_v51  ;;  %v570_v7 = vmul.f32 %v567_v51, %v1680_v17  ;;  %v573_v47 = vmul.f32 %v567_v51, %v1686_v29  ;;  %v500_v55 = vadd.f32 %v499_v5, %v498_v0 }
  0xae   : > { %v435_v12 = vadd.f32 %v434_v63, %v433_v42  ;;  %v608_v18 = vsel %vm607_vm9, %v200_v25, %v584_v23  ;;  %vm618_vm14 = vcmask 1046528   ;;  %vm656_vm15 = vcmask 130048  }
  0xaf   : > { %v569_v22 = vmul.f32 %v568_v50, %v535_v43  ;;  %v572_v30 = vmul.f32 %v568_v50, %v536_v44 }
  0xb1   : > { %v571_v61 = vadd.f32 %v570_v7, %v569_v22  ;;  %v574_v37 = vadd.f32 %v573_v47, %v572_v30  ;;  %v623_v47 = vld [vmem:[#allocation2 + $0x8] sm:$0xff] }
  0xb2   : > { %v1157_v27 = vpop.eup %1156 }
  0xb3   : > { %v1159_v53 = vpop.eup %1158  ;;  %v575_v17 = vmul.f32 %v571_v61, %v571_v61  ;;  %v576_v29 = vmul.f32 %v574_v37, %v574_v37  ;;  %v526_v6 = vmul.f32 0.25, %v1157_v27 }
  0xb4   : > { %v1161_v8 = vpop.eup %1160  ;;  %v295_v9 = vmul.f32 %v1159_v53, %v245_v60 }
  0xb5   : > { %v577_v10 = vadd.f32 %v576_v29, %v575_v17  ;;  %v1163_v16 = vpop.eup %1162  ;;  %v390_v38 = vmul.f32 %v1161_v8, %v340_v4  ;;  %v527_v19 = vsub.f32 1.0, %v526_v6  ;;  %v529_v3 = vmul.f32 %v526_v6, %v500_v55 }
  0xb6   : > { %v296_v11 = vmul.f32 %v295_v9, %v1693_v34  ;;  %v485_v26 = vmul.f32 %v1163_v16, %v435_v12  ;;  %v297_v33 = vmul.f32 %v295_v9, %v1695_v35 }
  0xb7   : > { %v578_v13 = vadd.f32 1e-12, %v577_v10  ;;  %v391_v15 = vmul.f32 %v390_v38, %v1703_v48  ;;  %v528_v62 = vmul.f32 %v527_v19, %v490_v21  ;;  %v392_v51 = vmul.f32 %v390_v38, %v1705_v49  ;;  %v622_v49 = vld [vmem:[#allocation2] sm:$0xff] }
  0xb8   : > { %v587_v28 = vrot.slane %v296_v11, 6  ;;  %v486_v31 = vmul.f32 %v485_v26, %v1717_v56  ;;  %v599_v40 = vrot.slane %v297_v33, 2  ;;  %v487_v56 = vmul.f32 %v485_v26, %v1719_v58 }
  0xb9   : > { %1164 = vrsqrt.f32 %v578_v13  ;;  %v530_v57 = vadd.f32 %v529_v3, %v528_v62  ;;  %v590_v32 = vrot.slane %v391_v15, 5  ;;  %v602_v45 = vrot.slane %v392_v51, 1 }
  0xba   : > { %v610_v34 = vsel %vm609_vm10, %v608_v18, %v587_v28  ;;  %v593_v14 = vrot.slane %v486_v31, 4  ;;  %v1055_v1 = vpack.c.bf16 %v623_v47, %v622_v49 }
  0xbb   : > { %v612_v41 = vsel %vm611_vm11, %v610_v34, %v590_v32 }
  0xbc   : > { %v613_v43 = vsel %vm207_vm0, %v612_v41, %v593_v14  ;;  %1056 = vmatprep.subr.bf16.mxu0 %v1055_v1  ;;  %1059 = vmatprep.subr.bf16.mxu1 %v1055_v1 }
  0xbd   : > { %1058 = vmatpush3.bf16.msra.mxu0 %v1055_v1  ;;  %1060 = vmatpush3.bf16.msra.mxu1 %v1055_v1 }
  0xc3   : > { %v1165_v24 = vpop.eup %1164 }
  0xc4   : > { %v580_v48 = vmul.f32 %v1165_v24, %v530_v57 }
  0xc6   : > { %v581_v36 = vmul.f32 %v580_v48, %v571_v61  ;;  %v582_v39 = vmul.f32 %v580_v48, %v574_v37 }
  0xc8   : > { %v596_v44 = vrot.slane %v581_v36, 3  ;;  %v605_v46 = vrot.slane %v582_v39, 7 }
  0xca   : > { %v615_v50 = vsel %vm614_vm12, %v613_v43, %v596_v44  ;;  %v620_v7 = vsel %vm607_vm9, %v487_v56, %v605_v46 }
  0xcb   : > { %v617_v35 = vsel %vm616_vm13, %v615_v50, %v599_v40  ;;  %v621_v22 = vsel %vm609_vm10, %v620_v7, 0.0 }
  0xcc   : > { %v619_v20 = vsel %vm618_vm14, %v617_v35, %v602_v45 }
  0xcd   : > { %624 = vxpose.xlu0.b32.start [1/2] (short) %v619_v20, 128 }
  0xd1   : > { %625 = vxpose.xlu0.b32.end [2/2] (short) %v621_v22, 128 }
 0x14d   : > { %v640_v58 = vpop.trf.xlu0 }
 0x14e   : > { %1031 = vmatprep.mubr.msk.f32.mxu0 %vm656_vm15, %v640_v58 }
 0x151   : > { %v641_v30 = vpop.trf.xlu0 }
 0x152   : > { %1032 = vmatmul.mubr.msk.f32.vlgmr.msra.gmra.mrb[0].mxu0 %vm656_vm15, %v641_v30 }
 0x155   : > { %v642_v52 = vpop.trf.xlu0 }
 0x156   : > { %1034 = vmatprep.mubr.msk.f32.mxu0 %vm656_vm15, %v642_v52 }
 0x159   : > { %v643_v54 = vpop.trf.xlu0 }
 0x15a   : > { %1035 = vmatmul.mubr.msk.f32.gmra.mrb[2].mxu0 %vm656_vm15, %v643_v54 }
 0x15d   : > { %v644_v59 = vpop.trf.xlu0 }
 0x15e   : > { %1037 = vmatprep.mubr.msk.f32.mxu0 %vm656_vm15, %v644_v59 }
 0x161   : > { %v645_v0 = vpop.trf.xlu0 }
 0x162   : > { %1038 = vmatmul.mubr.msk.f32.gmra.mrb[4].mxu0 %vm656_vm15, %v645_v0 }
 0x165   : > { %v646_v27 = vpop.trf.xlu0 }
 0x166   : > { %1040 = vmatprep.mubr.msk.f32.mxu0 %vm656_vm15, %v646_v27 }
 0x169   : > { %v647_v60 = vpop.trf.xlu0 }
 0x16a   : > { %1041 = vmatmul.mubr.msk.f32.gmra.mrb[6].mxu0 %vm656_vm15, %v647_v60 }
 0x16d   : > { %v648_v61 = vpop.trf.xlu0 }
 0x16e   : > { %1043 = vmatprep.mubr.msk.f32.mxu1 %vm656_vm15, %v648_v61 }
 0x171   : > { %v649_v37 = vpop.trf.xlu0 }
 0x172   : > { %1044 = vmatmul.mubr.msk.f32.vlgmr.msra.gmra.mrb[0].mxu1 %vm656_vm15, %v649_v37 }
 0x175   : > { %v650_v53 = vpop.trf.xlu0 }
 0x176   : > { %1046 = vmatprep.mubr.msk.f32.mxu1 %vm656_vm15, %v650_v53 }
 0x179   : > { %v651_v42 = vpop.trf.xlu0 }
 0x17a   : > { %1047 = vmatmul.mubr.msk.f32.gmra.mrb[2].mxu1 %vm656_vm15, %v651_v42 }
 0x17d   : > { %v652_v63 = vpop.trf.xlu0 }
 0x17e   : > { %1049 = vmatprep.mubr.msk.f32.mxu1 %vm656_vm15, %v652_v63 }
 0x181   : > { %v653_v17 = vpop.trf.xlu0 }
 0x182   : > { %1050 = vmatmul.mubr.msk.f32.gmra.mrb[4].mxu1 %vm656_vm15, %v653_v17 }
 0x185   : > { %v654_v29 = vpop.trf.xlu0 }
 0x186   : > { %1052 = vmatprep.mubr.msk.f32.mxu1 %vm656_vm15, %v654_v29 }
 0x189   : > { %v655_v4 = vpop.trf.xlu0 }
 0x18a   : > { %1053 = vmatmul.mubr.msk.f32.gmra.mrb[6].mxu1 %vm656_vm15, %v655_v4 }
 0x225   : > { %v1033_v5 = vpop.f32.mrb[0].mxu0 }
 0x226   : > { %851 = vst [vmem:[%s1769_s19 + $0x8] sm:$0xff] %v1033_v5  ;;  %v771_v6 = vpop.f32.mrb[1].mxu0 }
 0x227   : > { %850 = vst [vmem:[%s1769_s19] sm:$0xff] %v771_v6 }
 0x22d   : > { %v1036_v8 = vpop.f32.mrb[2].mxu0 }
 0x22e   : > { %853 = vst [vmem:[%s1769_s19 + $0x18] sm:$0xff] %v1036_v8  ;;  %v781_v9 = vpop.f32.mrb[3].mxu0 }
 0x22f   : > { %852 = vst [vmem:[%s1769_s19 + $0x10] sm:$0xff] %v781_v9 }
 0x235   : > { %v1039_v10 = vpop.f32.mrb[4].mxu0 }
 0x236   : > { %855 = vst [vmem:[%s1769_s19 + $0x28] sm:$0xff] %v1039_v10  ;;  %v791_v2 = vpop.f32.mrb[5].mxu0 }
 0x237   : > { %854 = vst [vmem:[%s1769_s19 + $0x20] sm:$0xff] %v791_v2 }
 0x23d   : > { %v1042_v12 = vpop.f32.mrb[6].mxu0 }
 0x23e   : > { %857 = vst [vmem:[%s1769_s19 + $0x38] sm:$0xff] %v1042_v12  ;;  %v801_v13 = vpop.f32.mrb[7].mxu0 }
 0x23f   : > { %856 = vst [vmem:[%s1769_s19 + $0x30] sm:$0xff] %v801_v13 }
 0x245   : > { %v1045_v16 = vpop.f32.mrb[0].mxu1 }
 0x246   : > { %859 = vst [vmem:[%s1769_s19 + $0x48] sm:$0xff] %v1045_v16  ;;  %v811_v38 = vpop.f32.mrb[1].mxu1 }
 0x247   : > { %858 = vst [vmem:[%s1769_s19 + $0x40] sm:$0xff] %v811_v38 }
 0x24d   : > { %v1048_v55 = vpop.f32.mrb[2].mxu1 }
 0x24e   : > { %861 = vst [vmem:[%s1769_s19 + $0x58] sm:$0xff] %v1048_v55  ;;  %v821_v19 = vpop.f32.mrb[3].mxu1 }
 0x24f   : > { %860 = vst [vmem:[%s1769_s19 + $0x50] sm:$0xff] %v821_v19 }
 0x255   : > { %v1051_v11 = vpop.f32.mrb[4].mxu1 }
 0x256   : > { %863 = vst [vmem:[%s1769_s19 + $0x68] sm:$0xff] %v1051_v11  ;;  %v831_v21 = vpop.f32.mrb[5].mxu1 }
 0x257   : > { %862 = vst [vmem:[%s1769_s19 + $0x60] sm:$0xff] %v831_v21 }
 0x25d   : > { %v1054_v23 = vpop.f32.mrb[6].mxu1 }
 0x25e   : > { %865 = vst [vmem:[%s1769_s19 + $0x78] sm:$0xff] %v1054_v23  ;;  %v841_v25 = vpop.f32.mrb[7].mxu1 }
 0x25f   : > { %864 = vst [vmem:[%s1769_s19 + $0x70] sm:$0xff] %v841_v25 }
 0x260   : > { %1237 = shalt.err (!%p1234_p8)
}
 0x261   : > { %s1238_s24 = scalar_lea.hbm %s1790_s6, 2048  ;;  %s1242_s26 = scalar_lea.hbm %s1845_s2, 4096 }
 0x262   : > { %p1239_p0 = scmp.ne.s32.totalorder %s1790_s6, %s1238_s24  ;;  %p1243_p12 = scmp.lt.u32.totalorder %s1790_s6, %s1845_s2 }
 0x263   : > { %p1244_p5 = scmp.lt.u32.totalorder %s1242_s26, %s1238_s24  ;;  %p1246_p9 = scmp.lt.u32.totalorder %s1238_s24, %s1790_s6 }
 0x264   : > { %p1240_p2 = pnand %p1239_p0, %p1864_p11 }
 0x265   : > { %p1245_p10 = por %p1244_p5, %p1243_p12 }
 0x266   : > { %p1241_p7 = pneg %p1240_p2 }
 0x267   : > { %p1247_p13 = por %p1246_p9, %p1245_p10 }
 0x269   : > { %p1248_p4 = pnand %p1247_p13, %p1241_p7 }
 0x26b   : > { %1251 = shalt.err (!%p1248_p4)
}
 0x26c   : > { %s1318_s17 = smov 128   ;;  %s1319_s19 = smov 8  }
 0x26d   : > { %1069 = dma.vmem_to_hbm [thread:$0]  (%p1864_p11), %s1792_s8, 2048, %s1790_s6, %s867_s16, %s1318_s17, %s1318_s17, %s1319_s19  }
 0x26e PF: > { %s896_s22 = sand.u32 1, %s1290_s9   ;;  %p1865_p1 = scmp.ne.s32.totalorder %s1856_s21, 0 }
 0x26f   : > { %p1866_p3 = scmp.ge.s32.totalorder %s1310_s14, 2  ;;  %s897_s15 = scalar_lea.sflag [#allocation4], %s896_s22 }
 0x271   : > { %p1080_p6 = pnand %p1866_p3, %p1865_p1 }
 0x273   : > { %1285 = dma.done.wait (!%p1080_p6), %s897_s15, 2048  }
 0x274   : > { %1287 = vsyncadd (!%p1080_p6), %s897_s15, 4294965248  ;;  %s19_s14 = sadd.s32 1, %s1310_s14   ;;  %s1867_s9 = smov %s1294_s10 }
 0x275   : > { %p16_p8 = scmp.ge.s32.totalorder %s19_s14, 4   ;;  %s1868_s10 = smov %s1298_s11 }
 0x276   : > { %s1869_s11 = smov %s1456_s7  ;;  %s1870_s12 = smov %s1306_s13 }
 0x277   : > { %s1871_s13 = smov %s1873_s27  ;;  %18 = sbr.rel (!%p16_p8) target bundleno = 7 (0x7), region = 79 }
 0x27e   :  { %902 = vsyncpa [#allocation3], 1 }
 0x27f   :  { %904 = vsyncpa [#allocation3 + $0x1], 1 }
 0x280   :  { %905 = vsyncpa [#allocation6], 1 }
 0x281   :  { %907 = vsyncpa [#allocation6 + $0x1], 1 }
 0x282   :  { %908 = vsyncpa [#allocation4], 1 }
 0x283   :  { %910 = vsyncpa [#allocation4 + $0x1], 1 }

</bundles_post_ra>
